<compile_context>
chip_gen: v5e
topology: v5e:2x2
jax: 0.10.0
libtpu: 0.0.40
codegen_flags: <defaults>
</compile_context>

<pallas_src>
import jax
import jax.numpy as jnp
from jax import lax
from jax.experimental import pallas as pl
from jax.experimental.pallas import tpu as pltpu


# Explicit MXU precision decision (per review): DEFAULT (bf16 MXU passes with
# f32 accumulation) is accepted -- at these tiny shapes the kernel is
# latency/dependency-chain bound, not MXU-pass bound, and the observed drift
# over T*num_layers=16 recurrent steps stays within ~2e-2 of the XLA reference.
# Switch to lax.Precision.HIGHEST for tighter f32 parity, or pre-cast
# weights/activations to bf16 on v6e/v7x once 4H >= 256 or B >= 128.
MXU_PRECISION = jax.lax.Precision.DEFAULT


# ----------------------------------------------------------------------------
# Fused kernel: stacked LSTM (layer-outer, time-inner) + last-valid-step
# select + FC epilogue.  Gate order matches PyTorch: [i, f, g, o] along 4*H.
# ----------------------------------------------------------------------------
def _make_fused_kernel(num_layers, T, Bb, D, H):

    def kernel(*refs):
        # refs: x, mask, (w_ih_t, w_hh_t, bias) * L, w_fc, b_fc,
        #       rep_out, prob_out, gproj_scratch, hseq_scratch
        x_ref = refs[0]
        mask_ref = refs[1]
        layer_refs = refs[2:2 + 3 * num_layers]
        wfc_ref = refs[2 + 3 * num_layers]
        bfc_ref = refs[3 + 3 * num_layers]
        rep_ref = refs[4 + 3 * num_layers]
        prob_ref = refs[5 + 3 * num_layers]
        gproj_ref = refs[6 + 3 * num_layers]   # (T, Bb, 4H) input-projection staging
        hseq_ref = refs[7 + 3 * num_layers]    # (T, Bb, H) inter-layer sequence

        rep = jnp.zeros((Bb, H), jnp.float32)

        for l in range(num_layers):
            wih_ref = layer_refs[3 * l + 0]    # (D_l, 4H)
            whh_ref = layer_refs[3 * l + 1]    # (H, 4H)
            b_ref = layer_refs[3 * l + 2]      # (1, 4H)
            d_in = D if l == 0 else H
            last = (l == num_layers - 1)

            # ---- (1) Input-side gate projection, hoisted off the recurrence.
            # One batched (T*Bb, d_in) @ (d_in, 4H) MXU call + folded bias.
            inp_seq = x_ref[...] if l == 0 else hseq_ref[...]        # (T, Bb, d_in)
            gx = (jnp.dot(inp_seq.reshape(T * Bb, d_in), wih_ref[...],
                          preferred_element_type=jnp.float32,
                          precision=MXU_PRECISION)
                  + jnp.broadcast_to(b_ref[...], (T * Bb, 4 * H)))
            gproj_ref[...] = gx.reshape(T, Bb, 4 * H)

            # ---- (2) Loop-invariant weight load hoisted out of the time loop.
            w_hh = whh_ref[...]                                       # (H, 4H)

            def cell(t, h_prev, c_prev, w_hh=w_hh):
                # Only the h->h matmul sits on the serial dependency chain.
                gates = gproj_ref[t] + jnp.dot(
                    h_prev, w_hh, preferred_element_type=jnp.float32,
                    precision=MXU_PRECISION)                          # (Bb, 4H)
                # One full-width sigmoid + one full-width tanh (2 EUP passes),
                # then static lane slices (PyTorch gate order i, f, g, o).
                sig = jax.nn.sigmoid(gates)
                tah = jnp.tanh(gates)
                i_g = sig[:, 0 * H:1 * H]
                f_g = sig[:, 1 * H:2 * H]
                g_g = tah[:, 2 * H:3 * H]
                o_g = sig[:, 3 * H:4 * H]
                c_new = f_g * c_prev + i_g * g_g
                h_new = o_g * jnp.tanh(c_new)
                return h_new, c_new

            zeros = jnp.zeros((Bb, H), jnp.float32)
            if last:
                # Top layer: select h at t == length-1 with a VPU where().
                def step(t, carry, cell=cell):
                    h_prev, c_prev, rep_acc = carry
                    h_new, c_new = cell(t, h_prev, c_prev)
                    rep_acc = jnp.where(mask_ref[t] != 0.0, h_new, rep_acc)
                    return (h_new, c_new, rep_acc)

                _, _, rep = lax.fori_loop(0, T, step, (zeros, zeros, rep),
                                          unroll=True)
            else:
                # Intermediate layer: stage output sequence for the next layer.
                def step(t, carry, cell=cell):
                    h_prev, c_prev = carry
                    h_new, c_new = cell(t, h_prev, c_prev)
                    hseq_ref[t] = h_new
                    return (h_new, c_new)

                lax.fori_loop(0, T, step, (zeros, zeros), unroll=True)

        rep_ref[...] = rep.astype(rep_ref.dtype)
        # FC epilogue: Linear(H, 2). Dropout(0.8) in eval mode is identity.
        prob_ref[...] = (jnp.dot(rep, wfc_ref[...],
                                 preferred_element_type=jnp.float32,
                                 precision=MXU_PRECISION)
                         + bfc_ref[...]).astype(prob_ref.dtype)

    return kernel


def fused_lstm_classifier(x, mask, layer_weights, w_fc_t, b_fc):
    """x: (T,B,D) f32; mask: (T,B,1) f32 one-hot over t at length-1;
    layer_weights: list of (w_ih_t (D_l,4H), w_hh_t (H,4H), bias (1,4H));
    w_fc_t: (H,O); b_fc: (1,O)."""
    T, B, D = x.shape
    H, O = w_fc_t.shape
    num_layers = len(layer_weights)

    # v7x: use both TensorCores by splitting batch across a parallel grid axis,
    # but only when the per-core batch stays >= 8 (f32 sublane minimum).
    batch_split = 2 if (B >= 16 and B % 16 == 0) else 1
    Bb = B // batch_split

    kernel = _make_fused_kernel(num_layers, T, Bb, D, H)

    inputs = [x, mask]
    in_specs = [
        pl.BlockSpec((T, Bb, D), lambda i: (0, i, 0)),
        pl.BlockSpec((T, Bb, 1), lambda i: (0, i, 0)),
    ]
    for w_ih_t, w_hh_t, bias in layer_weights:
        inputs += [w_ih_t, w_hh_t, bias]
        # TODO(synk): for large H on v7x (64 MiB VMEM), use bf16 weights and/or
        # pipeline_mode=pl.Buffered(1) on these loop-invariant weight specs.
        in_specs += [
            pl.BlockSpec(w_ih_t.shape, lambda i: (0, 0)),
            pl.BlockSpec(w_hh_t.shape, lambda i: (0, 0)),
            pl.BlockSpec(bias.shape, lambda i: (0, 0)),
        ]
    inputs += [w_fc_t, b_fc]
    in_specs += [
        pl.BlockSpec((H, O), lambda i: (0, 0)),
        pl.BlockSpec((1, O), lambda i: (0, 0)),
    ]

    out_shape = (jax.ShapeDtypeStruct((B, H), jnp.float32),
                 jax.ShapeDtypeStruct((B, O), jnp.float32))
    out_specs = (pl.BlockSpec((Bb, H), lambda i: (i, 0)),
                 pl.BlockSpec((Bb, O), lambda i: (i, 0)))

    return pl.pallas_call(
        kernel,
        out_shape=out_shape,
        grid=(batch_split,),
        in_specs=in_specs,
        out_specs=out_specs,
        scratch_shapes=[
            pltpu.VMEM((T, Bb, 4 * H), jnp.float32),   # input-projection staging
            pltpu.VMEM((T, Bb, H), jnp.float32),       # inter-layer h sequence
        ],
        compiler_params=pltpu.CompilerParams(
            dimension_semantics=("parallel",)),
    )(*inputs)


# ----------------------------------------------------------------------------
# Parameter init (deterministic, PyTorch-style U(-1/sqrt(H), 1/sqrt(H))).
# W_ih / W_hh are kept separate (transposed) so the input-side projection can
# be hoisted; biases folded (b_ih + b_hh) into the hoisted projection.
# ----------------------------------------------------------------------------
def init_params(key, input_size, hidden_size, layer_num):
    params = {"lstm": []}
    bound = 1.0 / float(hidden_size) ** 0.5
    for layer in range(layer_num):
        d_in = input_size if layer == 0 else hidden_size
        key, k1, k2, k3, k4 = jax.random.split(key, 5)
        w_ih = jax.random.uniform(k1, (4 * hidden_size, d_in),
                                  jnp.float32, -bound, bound)
        w_hh = jax.random.uniform(k2, (4 * hidden_size, hidden_size),
                                  jnp.float32, -bound, bound)
        b_ih = jax.random.uniform(k3, (4 * hidden_size,),
                                  jnp.float32, -bound, bound)
        b_hh = jax.random.uniform(k4, (4 * hidden_size,),
                                  jnp.float32, -bound, bound)
        params["lstm"].append({
            "w_ih_t": w_ih.T,                                       # (D_l, 4H)
            "w_hh_t": w_hh.T,                                       # (H, 4H)
            "bias": (b_ih + b_hh).reshape(1, 4 * hidden_size),      # (1, 4H)
        })
    key, k5, k6 = jax.random.split(key, 3)
    w_fc = jax.random.uniform(k5, (2, hidden_size), jnp.float32, -bound, bound)
    b_fc = jax.random.uniform(k6, (2,), jnp.float32, -bound, bound)
    params["fc"] = {"w_t": w_fc.T, "b": b_fc.reshape(1, 2)}
    return params


# ----------------------------------------------------------------------------
# Full forward: mask build (plain-JAX glue) -> single fused Pallas kernel.
# ----------------------------------------------------------------------------
@jax.jit
def lstm_classifier_forward(params, x, x_length):
    # x: (T, B, D) float32; x_length: (B,) int32, 1 <= length <= T
    T, B, _ = x.shape
    t_idx = jnp.arange(T, dtype=jnp.int32)
    onehot = t_idx[:, None] == (x_length.astype(jnp.int32) - 1)[None, :]
    mask = onehot.astype(jnp.float32)[:, :, None]                 # (T, B, 1)
    layer_weights = [(lp["w_ih_t"], lp["w_hh_t"], lp["bias"])
                     for lp in params["lstm"]]
    representation, prob = fused_lstm_classifier(
        x, mask, layer_weights, params["fc"]["w_t"], params["fc"]["b"])
    # Dropout(0.8) in eval mode is identity.
    return representation, prob


# ----------------------------------------------------------------------------
# Pure-JAX reference (for a sanity check in __main__).
# ----------------------------------------------------------------------------
def lstm_classifier_reference(params, x, x_length):
    T, B, _ = x.shape
    H = params["fc"]["w_t"].shape[0]
    out = x
    for lp in params["lstm"]:
        w_ih, w_hh, b = lp["w_ih_t"], lp["w_hh_t"], lp["bias"]

        def step(carry, x_t, w_ih=w_ih, w_hh=w_hh, b=b):
            h, c = carry
            gates = x_t @ w_ih + h @ w_hh + b
            i = jax.nn.sigmoid(gates[:, 0 * H:1 * H])
            f = jax.nn.sigmoid(gates[:, 1 * H:2 * H])
            g = jnp.tanh(gates[:, 2 * H:3 * H])
            o = jax.nn.sigmoid(gates[:, 3 * H:4 * H])
            c = f * c + i * g
            h = o * jnp.tanh(c)
            return (h, c), h

        (_, _), hs = lax.scan(
            step, (jnp.zeros((B, H), jnp.float32),
                   jnp.zeros((B, H), jnp.float32)), out)
        out = hs
    rep = out[x_length - 1, jnp.arange(B), :]
    prob = rep @ params["fc"]["w_t"] + params["fc"]["b"]
    return rep, prob


if __name__ == "__main__":
    SEQ, BATCH, INPUT, HIDDEN, LAYERS = 8, 8, 16, 32, 2

    key = jax.random.PRNGKey(0)
    key, kx = jax.random.split(key)
    x = jax.random.normal(kx, (SEQ, BATCH, INPUT), jnp.float32)
    x_length = jnp.array([8, 5, 3, 8, 2, 7, 6, 4], dtype=jnp.int32)

    params = init_params(jax.random.PRNGKey(42), INPUT, HIDDEN, LAYERS)

    representation, prob = lstm_classifier_forward(params, x, x_length)
    jax.block_until_ready((representation, prob))

    assert representation.shape == (BATCH, HIDDEN)
    assert prob.shape == (BATCH, 2)

    # Sanity check vs plain-JAX reference (loose tol: bf16 MXU passes over
    # 16 recurrent steps; see MXU_PRECISION note above).
    rep_ref, prob_ref = lstm_classifier_reference(params, x, x_length)
    assert float(jnp.max(jnp.abs(representation - rep_ref))) < 2e-2
    assert float(jnp.max(jnp.abs(prob - prob_ref))) < 2e-2

    print("KERNEL_OK")
</pallas_src>

<mosaic_0001>
module attributes {stable_mosaic.version = 11 : i64} {
  func.func @kernel(%arg0: i32, %arg1: memref<8x8x16xf32, #tpu.memory_space<vmem>>, %arg2: memref<8x8x1xf32, #tpu.memory_space<vmem>>, %arg3: memref<16x128xf32, #tpu.memory_space<vmem>>, %arg4: memref<32x128xf32, #tpu.memory_space<vmem>>, %arg5: memref<1x128xf32, #tpu.memory_space<vmem>>, %arg6: memref<32x128xf32, #tpu.memory_space<vmem>>, %arg7: memref<32x128xf32, #tpu.memory_space<vmem>>, %arg8: memref<1x128xf32, #tpu.memory_space<vmem>>, %arg9: memref<32x2xf32, #tpu.memory_space<vmem>>, %arg10: memref<1x2xf32, #tpu.memory_space<vmem>>, %arg11: memref<8x32xf32, #tpu.memory_space<vmem>>, %arg12: memref<8x2xf32, #tpu.memory_space<vmem>>, %arg13: memref<8x8x128xf32, #tpu.memory_space<vmem>>, %arg14: memref<8x8x32xf32, #tpu.memory_space<vmem>>) attributes {dimension_semantics = [#tpu.dimension_semantics<parallel>], iteration_bounds = array<i64: 1>, scalar_prefetch = 0 : i64, scratch_operands = 2 : i64, tpu.core_type = #tpu.core_type<tc>, window_params = [{transform_indices = @transform_0, window_bounds = array<i64: 8, 8, 16>}, {transform_indices = @transform_1, window_bounds = array<i64: 8, 8, 1>}, {pipeline_mode = #tpu.pipeline_mode<synchronous>, transform_indices = @transform_2, window_bounds = array<i64: 16, 128>}, {pipeline_mode = #tpu.pipeline_mode<synchronous>, transform_indices = @transform_3, window_bounds = array<i64: 32, 128>}, {pipeline_mode = #tpu.pipeline_mode<synchronous>, transform_indices = @transform_4, window_bounds = array<i64: 1, 128>}, {pipeline_mode = #tpu.pipeline_mode<synchronous>, transform_indices = @transform_5, window_bounds = array<i64: 32, 128>}, {pipeline_mode = #tpu.pipeline_mode<synchronous>, transform_indices = @transform_6, window_bounds = array<i64: 32, 128>}, {pipeline_mode = #tpu.pipeline_mode<synchronous>, transform_indices = @transform_7, window_bounds = array<i64: 1, 128>}, {pipeline_mode = #tpu.pipeline_mode<synchronous>, transform_indices = @transform_8, window_bounds = array<i64: 32, 2>}, {pipeline_mode = #tpu.pipeline_mode<synchronous>, transform_indices = @transform_9, window_bounds = array<i64: 1, 2>}, {transform_indices = @transform_10, window_bounds = array<i64: 8, 32>}, {transform_indices = @transform_11, window_bounds = array<i64: 8, 2>}]} {
    %cst = arith.constant 0.000000e+00 : f32
    %0 = vector.broadcast %cst : f32 to vector<8x32xf32>
    %c0 = arith.constant 0 : index
    %c0_0 = arith.constant 0 : index
    %c0_1 = arith.constant 0 : index
    %1 = vector.load %arg1[%c0, %c0_0, %c0_1] : memref<8x8x16xf32, #tpu.memory_space<vmem>>, vector<8x8x16xf32>
    %2 = vector.shape_cast %1 : vector<8x8x16xf32> to vector<64x16xf32>
    %c0_2 = arith.constant 0 : index
    %c0_3 = arith.constant 0 : index
    %3 = vector.load %arg3[%c0_2, %c0_3] : memref<16x128xf32, #tpu.memory_space<vmem>>, vector<16x128xf32>
    %cst_4 = arith.constant dense<0.000000e+00> : vector<64x128xf32>
    %4 = tpu.matmul %2, %3, %cst_4 {dimension_numbers = #tpu.dot_dimension_numbers<[1], [0], [0], [1], [0, 0, 1, 1], [], []>} : vector<64x16xf32>, vector<16x128xf32>, vector<64x128xf32> -> vector<64x128xf32>
    %c0_5 = arith.constant 0 : index
    %c0_6 = arith.constant 0 : index
    %5 = vector.load %arg5[%c0_5, %c0_6] : memref<1x128xf32, #tpu.memory_space<vmem>>, vector<1x128xf32>
    %6 = vector.shape_cast %5 : vector<1x128xf32> to vector<1x128xf32>
    %7 = vector.broadcast %6 : vector<1x128xf32> to vector<64x128xf32>
    %8 = arith.addf %4, %7 : vector<64x128xf32>
    %9 = vector.shape_cast %8 : vector<64x128xf32> to vector<8x8x128xf32>
    %c0_7 = arith.constant 0 : index
    %c0_8 = arith.constant 0 : index
    %c0_9 = arith.constant 0 : index
    %10 = vector.load %arg13[%c0_7, %c0_8, %c0_9] : memref<8x8x128xf32, #tpu.memory_space<vmem>>, vector<8x8x128xf32>
    tpu.vector_store %arg13[%c0_7, %c0_8, %c0_9], %9 {strides = array<i32>} : memref<8x8x128xf32, #tpu.memory_space<vmem>>, vector<8x8x128xf32>,
    %c0_10 = arith.constant 0 : index
    %c0_11 = arith.constant 0 : index
    %11 = vector.load %arg4[%c0_10, %c0_11] : memref<32x128xf32, #tpu.memory_space<vmem>>, vector<32x128xf32>
    %cst_12 = arith.constant 0.000000e+00 : f32
    %12 = vector.broadcast %cst_12 : f32 to vector<8x32xf32>
    %c0_i32 = arith.constant 0 : i32
    %13 = arith.index_cast %c0_i32 : i32 to index
    %c0_13 = arith.constant 0 : index
    %c0_14 = arith.constant 0 : index
    %14 = vector.load %arg13[%13, %c0_13, %c0_14] : memref<8x8x128xf32, #tpu.memory_space<vmem>>, vector<1x8x128xf32>
    %15 = vector.shape_cast %14 : vector<1x8x128xf32> to vector<8x128xf32>
    %cst_15 = arith.constant dense<0.000000e+00> : vector<8x128xf32>
    %16 = tpu.matmul %12, %11, %cst_15 {dimension_numbers = #tpu.dot_dimension_numbers<[1], [0], [0], [1], [0, 0, 1, 1], [], []>} : vector<8x32xf32>, vector<32x128xf32>, vector<8x128xf32> -> vector<8x128xf32>
    %17 = arith.addf %15, %16 : vector<8x128xf32>
    %18 = arith.negf %17 : vector<8x128xf32>
    %19 = math.exp %18 : vector<8x128xf32>
    %cst_16 = arith.constant 1.000000e+00 : f32
    %20 = vector.broadcast %cst_16 : f32 to vector<8x128xf32>
    %21 = arith.addf %20, %19 : vector<8x128xf32>
    %22 = arith.divf %20, %21 : vector<8x128xf32>
    %23 = math.tanh %17 : vector<8x128xf32>
    %24 = vector.extract_strided_slice %22 {offsets = [0, 0], sizes = [8, 32], strides = [1, 1]} : vector<8x128xf32> to vector<8x32xf32>
    %25 = vector.extract_strided_slice %22 {offsets = [0, 32], sizes = [8, 32], strides = [1, 1]} : vector<8x128xf32> to vector<8x32xf32>
    %26 = vector.extract_strided_slice %23 {offsets = [0, 64], sizes = [8, 32], strides = [1, 1]} : vector<8x128xf32> to vector<8x32xf32>
    %27 = vector.extract_strided_slice %22 {offsets = [0, 96], sizes = [8, 32], strides = [1, 1]} : vector<8x128xf32> to vector<8x32xf32>
    %28 = arith.mulf %25, %12 : vector<8x32xf32>
    %29 = arith.mulf %24, %26 : vector<8x32xf32>
    %30 = arith.addf %28, %29 : vector<8x32xf32>
    %31 = math.tanh %30 : vector<8x32xf32>
    %32 = arith.mulf %27, %31 : vector<8x32xf32>
    %33 = arith.index_cast %c0_i32 : i32 to index
    %c0_17 = arith.constant 0 : index
    %c0_18 = arith.constant 0 : index
    %34 = vector.load %arg14[%33, %c0_17, %c0_18] : memref<8x8x32xf32, #tpu.memory_space<vmem>>, vector<1x8x32xf32>
    %35 = vector.shape_cast %34 : vector<1x8x32xf32> to vector<8x32xf32>
    %36 = vector.shape_cast %32 : vector<8x32xf32> to vector<1x8x32xf32>
    tpu.vector_store %arg14[%33, %c0_17, %c0_18], %36 {strides = array<i32>} : memref<8x8x32xf32, #tpu.memory_space<vmem>>, vector<1x8x32xf32>,
    %c1_i32 = arith.constant 1 : i32
    %37 = arith.index_cast %c1_i32 : i32 to index
    %c0_19 = arith.constant 0 : index
    %c0_20 = arith.constant 0 : index
    %38 = vector.load %arg13[%37, %c0_19, %c0_20] : memref<8x8x128xf32, #tpu.memory_space<vmem>>, vector<1x8x128xf32>
    %39 = vector.shape_cast %38 : vector<1x8x128xf32> to vector<8x128xf32>
    %cst_21 = arith.constant dense<0.000000e+00> : vector<8x128xf32>
    %40 = tpu.matmul %32, %11, %cst_21 {dimension_numbers = #tpu.dot_dimension_numbers<[1], [0], [0], [1], [0, 0, 1, 1], [], []>} : vector<8x32xf32>, vector<32x128xf32>, vector<8x128xf32> -> vector<8x128xf32>
    %41 = arith.addf %39, %40 : vector<8x128xf32>
    %42 = arith.negf %41 : vector<8x128xf32>
    %43 = math.exp %42 : vector<8x128xf32>
    %cst_22 = arith.constant 1.000000e+00 : f32
    %44 = vector.broadcast %cst_22 : f32 to vector<8x128xf32>
    %45 = arith.addf %44, %43 : vector<8x128xf32>
    %46 = arith.divf %44, %45 : vector<8x128xf32>
    %47 = math.tanh %41 : vector<8x128xf32>
    %48 = vector.extract_strided_slice %46 {offsets = [0, 0], sizes = [8, 32], strides = [1, 1]} : vector<8x128xf32> to vector<8x32xf32>
    %49 = vector.extract_strided_slice %46 {offsets = [0, 32], sizes = [8, 32], strides = [1, 1]} : vector<8x128xf32> to vector<8x32xf32>
    %50 = vector.extract_strided_slice %47 {offsets = [0, 64], sizes = [8, 32], strides = [1, 1]} : vector<8x128xf32> to vector<8x32xf32>
    %51 = vector.extract_strided_slice %46 {offsets = [0, 96], sizes = [8, 32], strides = [1, 1]} : vector<8x128xf32> to vector<8x32xf32>
    %52 = arith.mulf %49, %30 : vector<8x32xf32>
    %53 = arith.mulf %48, %50 : vector<8x32xf32>
    %54 = arith.addf %52, %53 : vector<8x32xf32>
    %55 = math.tanh %54 : vector<8x32xf32>
    %56 = arith.mulf %51, %55 : vector<8x32xf32>
    %57 = arith.index_cast %c1_i32 : i32 to index
    %c0_23 = arith.constant 0 : index
    %c0_24 = arith.constant 0 : index
    %58 = vector.load %arg14[%57, %c0_23, %c0_24] : memref<8x8x32xf32, #tpu.memory_space<vmem>>, vector<1x8x32xf32>
    %59 = vector.shape_cast %58 : vector<1x8x32xf32> to vector<8x32xf32>
    %60 = vector.shape_cast %56 : vector<8x32xf32> to vector<1x8x32xf32>
    tpu.vector_store %arg14[%57, %c0_23, %c0_24], %60 {strides = array<i32>} : memref<8x8x32xf32, #tpu.memory_space<vmem>>, vector<1x8x32xf32>,
    %c2_i32 = arith.constant 2 : i32
    %61 = arith.index_cast %c2_i32 : i32 to index
    %c0_25 = arith.constant 0 : index
    %c0_26 = arith.constant 0 : index
    %62 = vector.load %arg13[%61, %c0_25, %c0_26] : memref<8x8x128xf32, #tpu.memory_space<vmem>>, vector<1x8x128xf32>
    %63 = vector.shape_cast %62 : vector<1x8x128xf32> to vector<8x128xf32>
    %cst_27 = arith.constant dense<0.000000e+00> : vector<8x128xf32>
    %64 = tpu.matmul %56, %11, %cst_27 {dimension_numbers = #tpu.dot_dimension_numbers<[1], [0], [0], [1], [0, 0, 1, 1], [], []>} : vector<8x32xf32>, vector<32x128xf32>, vector<8x128xf32> -> vector<8x128xf32>
    %65 = arith.addf %63, %64 : vector<8x128xf32>
    %66 = arith.negf %65 : vector<8x128xf32>
    %67 = math.exp %66 : vector<8x128xf32>
    %cst_28 = arith.constant 1.000000e+00 : f32
    %68 = vector.broadcast %cst_28 : f32 to vector<8x128xf32>
    %69 = arith.addf %68, %67 : vector<8x128xf32>
    %70 = arith.divf %68, %69 : vector<8x128xf32>
    %71 = math.tanh %65 : vector<8x128xf32>
    %72 = vector.extract_strided_slice %70 {offsets = [0, 0], sizes = [8, 32], strides = [1, 1]} : vector<8x128xf32> to vector<8x32xf32>
    %73 = vector.extract_strided_slice %70 {offsets = [0, 32], sizes = [8, 32], strides = [1, 1]} : vector<8x128xf32> to vector<8x32xf32>
    %74 = vector.extract_strided_slice %71 {offsets = [0, 64], sizes = [8, 32], strides = [1, 1]} : vector<8x128xf32> to vector<8x32xf32>
    %75 = vector.extract_strided_slice %70 {offsets = [0, 96], sizes = [8, 32], strides = [1, 1]} : vector<8x128xf32> to vector<8x32xf32>
    %76 = arith.mulf %73, %54 : vector<8x32xf32>
    %77 = arith.mulf %72, %74 : vector<8x32xf32>
    %78 = arith.addf %76, %77 : vector<8x32xf32>
    %79 = math.tanh %78 : vector<8x32xf32>
    %80 = arith.mulf %75, %79 : vector<8x32xf32>
    %81 = arith.index_cast %c2_i32 : i32 to index
    %c0_29 = arith.constant 0 : index
    %c0_30 = arith.constant 0 : index
    %82 = vector.load %arg14[%81, %c0_29, %c0_30] : memref<8x8x32xf32, #tpu.memory_space<vmem>>, vector<1x8x32xf32>
    %83 = vector.shape_cast %82 : vector<1x8x32xf32> to vector<8x32xf32>
    %84 = vector.shape_cast %80 : vector<8x32xf32> to vector<1x8x32xf32>
    tpu.vector_store %arg14[%81, %c0_29, %c0_30], %84 {strides = array<i32>} : memref<8x8x32xf32, #tpu.memory_space<vmem>>, vector<1x8x32xf32>,
    %c3_i32 = arith.constant 3 : i32
    %85 = arith.index_cast %c3_i32 : i32 to index
    %c0_31 = arith.constant 0 : index
    %c0_32 = arith.constant 0 : index
    %86 = vector.load %arg13[%85, %c0_31, %c0_32] : memref<8x8x128xf32, #tpu.memory_space<vmem>>, vector<1x8x128xf32>
    %87 = vector.shape_cast %86 : vector<1x8x128xf32> to vector<8x128xf32>
    %cst_33 = arith.constant dense<0.000000e+00> : vector<8x128xf32>
    %88 = tpu.matmul %80, %11, %cst_33 {dimension_numbers = #tpu.dot_dimension_numbers<[1], [0], [0], [1], [0, 0, 1, 1], [], []>} : vector<8x32xf32>, vector<32x128xf32>, vector<8x128xf32> -> vector<8x128xf32>
    %89 = arith.addf %87, %88 : vector<8x128xf32>
    %90 = arith.negf %89 : vector<8x128xf32>
    %91 = math.exp %90 : vector<8x128xf32>
    %cst_34 = arith.constant 1.000000e+00 : f32
    %92 = vector.broadcast %cst_34 : f32 to vector<8x128xf32>
    %93 = arith.addf %92, %91 : vector<8x128xf32>
    %94 = arith.divf %92, %93 : vector<8x128xf32>
    %95 = math.tanh %89 : vector<8x128xf32>
    %96 = vector.extract_strided_slice %94 {offsets = [0, 0], sizes = [8, 32], strides = [1, 1]} : vector<8x128xf32> to vector<8x32xf32>
    %97 = vector.extract_strided_slice %94 {offsets = [0, 32], sizes = [8, 32], strides = [1, 1]} : vector<8x128xf32> to vector<8x32xf32>
    %98 = vector.extract_strided_slice %95 {offsets = [0, 64], sizes = [8, 32], strides = [1, 1]} : vector<8x128xf32> to vector<8x32xf32>
    %99 = vector.extract_strided_slice %94 {offsets = [0, 96], sizes = [8, 32], strides = [1, 1]} : vector<8x128xf32> to vector<8x32xf32>
    %100 = arith.mulf %97, %78 : vector<8x32xf32>
    %101 = arith.mulf %96, %98 : vector<8x32xf32>
    %102 = arith.addf %100, %101 : vector<8x32xf32>
    %103 = math.tanh %102 : vector<8x32xf32>
    %104 = arith.mulf %99, %103 : vector<8x32xf32>
    %105 = arith.index_cast %c3_i32 : i32 to index
    %c0_35 = arith.constant 0 : index
    %c0_36 = arith.constant 0 : index
    %106 = vector.load %arg14[%105, %c0_35, %c0_36] : memref<8x8x32xf32, #tpu.memory_space<vmem>>, vector<1x8x32xf32>
    %107 = vector.shape_cast %106 : vector<1x8x32xf32> to vector<8x32xf32>
    %108 = vector.shape_cast %104 : vector<8x32xf32> to vector<1x8x32xf32>
    tpu.vector_store %arg14[%105, %c0_35, %c0_36], %108 {strides = array<i32>} : memref<8x8x32xf32, #tpu.memory_space<vmem>>, vector<1x8x32xf32>,
    %c4_i32 = arith.constant 4 : i32
    %109 = arith.index_cast %c4_i32 : i32 to index
    %c0_37 = arith.constant 0 : index
    %c0_38 = arith.constant 0 : index
    %110 = vector.load %arg13[%109, %c0_37, %c0_38] : memref<8x8x128xf32, #tpu.memory_space<vmem>>, vector<1x8x128xf32>
    %111 = vector.shape_cast %110 : vector<1x8x128xf32> to vector<8x128xf32>
    %cst_39 = arith.constant dense<0.000000e+00> : vector<8x128xf32>
    %112 = tpu.matmul %104, %11, %cst_39 {dimension_numbers = #tpu.dot_dimension_numbers<[1], [0], [0], [1], [0, 0, 1, 1], [], []>} : vector<8x32xf32>, vector<32x128xf32>, vector<8x128xf32> -> vector<8x128xf32>
    %113 = arith.addf %111, %112 : vector<8x128xf32>
    %114 = arith.negf %113 : vector<8x128xf32>
    %115 = math.exp %114 : vector<8x128xf32>
    %cst_40 = arith.constant 1.000000e+00 : f32
    %116 = vector.broadcast %cst_40 : f32 to vector<8x128xf32>
    %117 = arith.addf %116, %115 : vector<8x128xf32>
    %118 = arith.divf %116, %117 : vector<8x128xf32>
    %119 = math.tanh %113 : vector<8x128xf32>
    %120 = vector.extract_strided_slice %118 {offsets = [0, 0], sizes = [8, 32], strides = [1, 1]} : vector<8x128xf32> to vector<8x32xf32>
    %121 = vector.extract_strided_slice %118 {offsets = [0, 32], sizes = [8, 32], strides = [1, 1]} : vector<8x128xf32> to vector<8x32xf32>
    %122 = vector.extract_strided_slice %119 {offsets = [0, 64], sizes = [8, 32], strides = [1, 1]} : vector<8x128xf32> to vector<8x32xf32>
    %123 = vector.extract_strided_slice %118 {offsets = [0, 96], sizes = [8, 32], strides = [1, 1]} : vector<8x128xf32> to vector<8x32xf32>
    %124 = arith.mulf %121, %102 : vector<8x32xf32>
    %125 = arith.mulf %120, %122 : vector<8x32xf32>
    %126 = arith.addf %124, %125 : vector<8x32xf32>
    %127 = math.tanh %126 : vector<8x32xf32>
    %128 = arith.mulf %123, %127 : vector<8x32xf32>
    %129 = arith.index_cast %c4_i32 : i32 to index
    %c0_41 = arith.constant 0 : index
    %c0_42 = arith.constant 0 : index
    %130 = vector.load %arg14[%129, %c0_41, %c0_42] : memref<8x8x32xf32, #tpu.memory_space<vmem>>, vector<1x8x32xf32>
    %131 = vector.shape_cast %130 : vector<1x8x32xf32> to vector<8x32xf32>
    %132 = vector.shape_cast %128 : vector<8x32xf32> to vector<1x8x32xf32>
    tpu.vector_store %arg14[%129, %c0_41, %c0_42], %132 {strides = array<i32>} : memref<8x8x32xf32, #tpu.memory_space<vmem>>, vector<1x8x32xf32>,
    %c5_i32 = arith.constant 5 : i32
    %133 = arith.index_cast %c5_i32 : i32 to index
    %c0_43 = arith.constant 0 : index
    %c0_44 = arith.constant 0 : index
    %134 = vector.load %arg13[%133, %c0_43, %c0_44] : memref<8x8x128xf32, #tpu.memory_space<vmem>>, vector<1x8x128xf32>
    %135 = vector.shape_cast %134 : vector<1x8x128xf32> to vector<8x128xf32>
    %cst_45 = arith.constant dense<0.000000e+00> : vector<8x128xf32>
    %136 = tpu.matmul %128, %11, %cst_45 {dimension_numbers = #tpu.dot_dimension_numbers<[1], [0], [0], [1], [0, 0, 1, 1], [], []>} : vector<8x32xf32>, vector<32x128xf32>, vector<8x128xf32> -> vector<8x128xf32>
    %137 = arith.addf %135, %136 : vector<8x128xf32>
    %138 = arith.negf %137 : vector<8x128xf32>
    %139 = math.exp %138 : vector<8x128xf32>
    %cst_46 = arith.constant 1.000000e+00 : f32
    %140 = vector.broadcast %cst_46 : f32 to vector<8x128xf32>
    %141 = arith.addf %140, %139 : vector<8x128xf32>
    %142 = arith.divf %140, %141 : vector<8x128xf32>
    %143 = math.tanh %137 : vector<8x128xf32>
    %144 = vector.extract_strided_slice %142 {offsets = [0, 0], sizes = [8, 32], strides = [1, 1]} : vector<8x128xf32> to vector<8x32xf32>
    %145 = vector.extract_strided_slice %142 {offsets = [0, 32], sizes = [8, 32], strides = [1, 1]} : vector<8x128xf32> to vector<8x32xf32>
    %146 = vector.extract_strided_slice %143 {offsets = [0, 64], sizes = [8, 32], strides = [1, 1]} : vector<8x128xf32> to vector<8x32xf32>
    %147 = vector.extract_strided_slice %142 {offsets = [0, 96], sizes = [8, 32], strides = [1, 1]} : vector<8x128xf32> to vector<8x32xf32>
    %148 = arith.mulf %145, %126 : vector<8x32xf32>
    %149 = arith.mulf %144, %146 : vector<8x32xf32>
    %150 = arith.addf %148, %149 : vector<8x32xf32>
    %151 = math.tanh %150 : vector<8x32xf32>
    %152 = arith.mulf %147, %151 : vector<8x32xf32>
    %153 = arith.index_cast %c5_i32 : i32 to index
    %c0_47 = arith.constant 0 : index
    %c0_48 = arith.constant 0 : index
    %154 = vector.load %arg14[%153, %c0_47, %c0_48] : memref<8x8x32xf32, #tpu.memory_space<vmem>>, vector<1x8x32xf32>
    %155 = vector.shape_cast %154 : vector<1x8x32xf32> to vector<8x32xf32>
    %156 = vector.shape_cast %152 : vector<8x32xf32> to vector<1x8x32xf32>
    tpu.vector_store %arg14[%153, %c0_47, %c0_48], %156 {strides = array<i32>} : memref<8x8x32xf32, #tpu.memory_space<vmem>>, vector<1x8x32xf32>,
    %c6_i32 = arith.constant 6 : i32
    %157 = arith.index_cast %c6_i32 : i32 to index
    %c0_49 = arith.constant 0 : index
    %c0_50 = arith.constant 0 : index
    %158 = vector.load %arg13[%157, %c0_49, %c0_50] : memref<8x8x128xf32, #tpu.memory_space<vmem>>, vector<1x8x128xf32>
    %159 = vector.shape_cast %158 : vector<1x8x128xf32> to vector<8x128xf32>
    %cst_51 = arith.constant dense<0.000000e+00> : vector<8x128xf32>
    %160 = tpu.matmul %152, %11, %cst_51 {dimension_numbers = #tpu.dot_dimension_numbers<[1], [0], [0], [1], [0, 0, 1, 1], [], []>} : vector<8x32xf32>, vector<32x128xf32>, vector<8x128xf32> -> vector<8x128xf32>
    %161 = arith.addf %159, %160 : vector<8x128xf32>
    %162 = arith.negf %161 : vector<8x128xf32>
    %163 = math.exp %162 : vector<8x128xf32>
    %cst_52 = arith.constant 1.000000e+00 : f32
    %164 = vector.broadcast %cst_52 : f32 to vector<8x128xf32>
    %165 = arith.addf %164, %163 : vector<8x128xf32>
    %166 = arith.divf %164, %165 : vector<8x128xf32>
    %167 = math.tanh %161 : vector<8x128xf32>
    %168 = vector.extract_strided_slice %166 {offsets = [0, 0], sizes = [8, 32], strides = [1, 1]} : vector<8x128xf32> to vector<8x32xf32>
    %169 = vector.extract_strided_slice %166 {offsets = [0, 32], sizes = [8, 32], strides = [1, 1]} : vector<8x128xf32> to vector<8x32xf32>
    %170 = vector.extract_strided_slice %167 {offsets = [0, 64], sizes = [8, 32], strides = [1, 1]} : vector<8x128xf32> to vector<8x32xf32>
    %171 = vector.extract_strided_slice %166 {offsets = [0, 96], sizes = [8, 32], strides = [1, 1]} : vector<8x128xf32> to vector<8x32xf32>
    %172 = arith.mulf %169, %150 : vector<8x32xf32>
    %173 = arith.mulf %168, %170 : vector<8x32xf32>
    %174 = arith.addf %172, %173 : vector<8x32xf32>
    %175 = math.tanh %174 : vector<8x32xf32>
    %176 = arith.mulf %171, %175 : vector<8x32xf32>
    %177 = arith.index_cast %c6_i32 : i32 to index
    %c0_53 = arith.constant 0 : index
    %c0_54 = arith.constant 0 : index
    %178 = vector.load %arg14[%177, %c0_53, %c0_54] : memref<8x8x32xf32, #tpu.memory_space<vmem>>, vector<1x8x32xf32>
    %179 = vector.shape_cast %178 : vector<1x8x32xf32> to vector<8x32xf32>
    %180 = vector.shape_cast %176 : vector<8x32xf32> to vector<1x8x32xf32>
    tpu.vector_store %arg14[%177, %c0_53, %c0_54], %180 {strides = array<i32>} : memref<8x8x32xf32, #tpu.memory_space<vmem>>, vector<1x8x32xf32>,
    %c7_i32 = arith.constant 7 : i32
    %181 = arith.index_cast %c7_i32 : i32 to index
    %c0_55 = arith.constant 0 : index
    %c0_56 = arith.constant 0 : index
    %182 = vector.load %arg13[%181, %c0_55, %c0_56] : memref<8x8x128xf32, #tpu.memory_space<vmem>>, vector<1x8x128xf32>
    %183 = vector.shape_cast %182 : vector<1x8x128xf32> to vector<8x128xf32>
    %cst_57 = arith.constant dense<0.000000e+00> : vector<8x128xf32>
    %184 = tpu.matmul %176, %11, %cst_57 {dimension_numbers = #tpu.dot_dimension_numbers<[1], [0], [0], [1], [0, 0, 1, 1], [], []>} : vector<8x32xf32>, vector<32x128xf32>, vector<8x128xf32> -> vector<8x128xf32>
    %185 = arith.addf %183, %184 : vector<8x128xf32>
    %186 = arith.negf %185 : vector<8x128xf32>
    %187 = math.exp %186 : vector<8x128xf32>
    %cst_58 = arith.constant 1.000000e+00 : f32
    %188 = vector.broadcast %cst_58 : f32 to vector<8x128xf32>
    %189 = arith.addf %188, %187 : vector<8x128xf32>
    %190 = arith.divf %188, %189 : vector<8x128xf32>
    %191 = math.tanh %185 : vector<8x128xf32>
    %192 = vector.extract_strided_slice %190 {offsets = [0, 0], sizes = [8, 32], strides = [1, 1]} : vector<8x128xf32> to vector<8x32xf32>
    %193 = vector.extract_strided_slice %190 {offsets = [0, 32], sizes = [8, 32], strides = [1, 1]} : vector<8x128xf32> to vector<8x32xf32>
    %194 = vector.extract_strided_slice %191 {offsets = [0, 64], sizes = [8, 32], strides = [1, 1]} : vector<8x128xf32> to vector<8x32xf32>
    %195 = vector.extract_strided_slice %190 {offsets = [0, 96], sizes = [8, 32], strides = [1, 1]} : vector<8x128xf32> to vector<8x32xf32>
    %196 = arith.mulf %193, %174 : vector<8x32xf32>
    %197 = arith.mulf %192, %194 : vector<8x32xf32>
    %198 = arith.addf %196, %197 : vector<8x32xf32>
    %199 = math.tanh %198 : vector<8x32xf32>
    %200 = arith.mulf %195, %199 : vector<8x32xf32>
    %201 = arith.index_cast %c7_i32 : i32 to index
    %c0_59 = arith.constant 0 : index
    %c0_60 = arith.constant 0 : index
    %202 = vector.load %arg14[%201, %c0_59, %c0_60] : memref<8x8x32xf32, #tpu.memory_space<vmem>>, vector<1x8x32xf32>
    %203 = vector.shape_cast %202 : vector<1x8x32xf32> to vector<8x32xf32>
    %204 = vector.shape_cast %200 : vector<8x32xf32> to vector<1x8x32xf32>
    tpu.vector_store %arg14[%201, %c0_59, %c0_60], %204 {strides = array<i32>} : memref<8x8x32xf32, #tpu.memory_space<vmem>>, vector<1x8x32xf32>,
    %c8_i32 = arith.constant 8 : i32
    %c0_61 = arith.constant 0 : index
    %c0_62 = arith.constant 0 : index
    %c0_63 = arith.constant 0 : index
    %205 = vector.load %arg14[%c0_61, %c0_62, %c0_63] : memref<8x8x32xf32, #tpu.memory_space<vmem>>, vector<8x8x32xf32>
    %206 = vector.shape_cast %205 : vector<8x8x32xf32> to vector<64x32xf32>
    %c0_64 = arith.constant 0 : index
    %c0_65 = arith.constant 0 : index
    %207 = vector.load %arg6[%c0_64, %c0_65] : memref<32x128xf32, #tpu.memory_space<vmem>>, vector<32x128xf32>
    %cst_66 = arith.constant dense<0.000000e+00> : vector<64x128xf32>
    %208 = tpu.matmul %206, %207, %cst_66 {dimension_numbers = #tpu.dot_dimension_numbers<[1], [0], [0], [1], [0, 0, 1, 1], [], []>} : vector<64x32xf32>, vector<32x128xf32>, vector<64x128xf32> -> vector<64x128xf32>
    %c0_67 = arith.constant 0 : index
    %c0_68 = arith.constant 0 : index
    %209 = vector.load %arg8[%c0_67, %c0_68] : memref<1x128xf32, #tpu.memory_space<vmem>>, vector<1x128xf32>
    %210 = vector.shape_cast %209 : vector<1x128xf32> to vector<1x128xf32>
    %211 = vector.broadcast %210 : vector<1x128xf32> to vector<64x128xf32>
    %212 = arith.addf %208, %211 : vector<64x128xf32>
    %213 = vector.shape_cast %212 : vector<64x128xf32> to vector<8x8x128xf32>
    %c0_69 = arith.constant 0 : index
    %c0_70 = arith.constant 0 : index
    %c0_71 = arith.constant 0 : index
    %214 = vector.load %arg13[%c0_69, %c0_70, %c0_71] : memref<8x8x128xf32, #tpu.memory_space<vmem>>, vector<8x8x128xf32>
    tpu.vector_store %arg13[%c0_69, %c0_70, %c0_71], %213 {strides = array<i32>} : memref<8x8x128xf32, #tpu.memory_space<vmem>>, vector<8x8x128xf32>,
    %c0_72 = arith.constant 0 : index
    %c0_73 = arith.constant 0 : index
    %215 = vector.load %arg7[%c0_72, %c0_73] : memref<32x128xf32, #tpu.memory_space<vmem>>, vector<32x128xf32>
    %cst_74 = arith.constant 0.000000e+00 : f32
    %216 = vector.broadcast %cst_74 : f32 to vector<8x32xf32>
    %c0_i32_75 = arith.constant 0 : i32
    %217 = arith.index_cast %c0_i32_75 : i32 to index
    %c0_76 = arith.constant 0 : index
    %c0_77 = arith.constant 0 : index
    %218 = vector.load %arg13[%217, %c0_76, %c0_77] : memref<8x8x128xf32, #tpu.memory_space<vmem>>, vector<1x8x128xf32>
    %219 = vector.shape_cast %218 : vector<1x8x128xf32> to vector<8x128xf32>
    %cst_78 = arith.constant dense<0.000000e+00> : vector<8x128xf32>
    %220 = tpu.matmul %216, %215, %cst_78 {dimension_numbers = #tpu.dot_dimension_numbers<[1], [0], [0], [1], [0, 0, 1, 1], [], []>} : vector<8x32xf32>, vector<32x128xf32>, vector<8x128xf32> -> vector<8x128xf32>
    %221 = arith.addf %219, %220 : vector<8x128xf32>
    %222 = arith.negf %221 : vector<8x128xf32>
    %223 = math.exp %222 : vector<8x128xf32>
    %cst_79 = arith.constant 1.000000e+00 : f32
    %224 = vector.broadcast %cst_79 : f32 to vector<8x128xf32>
    %225 = arith.addf %224, %223 : vector<8x128xf32>
    %226 = arith.divf %224, %225 : vector<8x128xf32>
    %227 = math.tanh %221 : vector<8x128xf32>
    %228 = vector.extract_strided_slice %226 {offsets = [0, 0], sizes = [8, 32], strides = [1, 1]} : vector<8x128xf32> to vector<8x32xf32>
    %229 = vector.extract_strided_slice %226 {offsets = [0, 32], sizes = [8, 32], strides = [1, 1]} : vector<8x128xf32> to vector<8x32xf32>
    %230 = vector.extract_strided_slice %227 {offsets = [0, 64], sizes = [8, 32], strides = [1, 1]} : vector<8x128xf32> to vector<8x32xf32>
    %231 = vector.extract_strided_slice %226 {offsets = [0, 96], sizes = [8, 32], strides = [1, 1]} : vector<8x128xf32> to vector<8x32xf32>
    %232 = arith.mulf %229, %216 : vector<8x32xf32>
    %233 = arith.mulf %228, %230 : vector<8x32xf32>
    %234 = arith.addf %232, %233 : vector<8x32xf32>
    %235 = math.tanh %234 : vector<8x32xf32>
    %236 = arith.mulf %231, %235 : vector<8x32xf32>
    %237 = arith.index_cast %c0_i32_75 : i32 to index
    %c0_80 = arith.constant 0 : index
    %c0_81 = arith.constant 0 : index
    %238 = vector.load %arg2[%237, %c0_80, %c0_81] : memref<8x8x1xf32, #tpu.memory_space<vmem>>, vector<1x8x1xf32>
    %239 = vector.shape_cast %238 : vector<1x8x1xf32> to vector<8x1xf32>
    %cst_82 = arith.constant 0.000000e+00 : f32
    %240 = vector.broadcast %cst_82 : f32 to vector<8x1xf32>
    %241 = arith.cmpf one, %239, %240 : vector<8x1xf32>
    %242 = vector.shape_cast %241 : vector<8x1xi1> to vector<8x1xi1>
    %243 = vector.broadcast %242 : vector<8x1xi1> to vector<8x32xi1>
    %244 = arith.select %243, %236, %0 : vector<8x32xi1>, vector<8x32xf32>
    %c1_i32_83 = arith.constant 1 : i32
    %245 = arith.index_cast %c1_i32_83 : i32 to index
    %c0_84 = arith.constant 0 : index
    %c0_85 = arith.constant 0 : index
    %246 = vector.load %arg13[%245, %c0_84, %c0_85] : memref<8x8x128xf32, #tpu.memory_space<vmem>>, vector<1x8x128xf32>
    %247 = vector.shape_cast %246 : vector<1x8x128xf32> to vector<8x128xf32>
    %cst_86 = arith.constant dense<0.000000e+00> : vector<8x128xf32>
    %248 = tpu.matmul %236, %215, %cst_86 {dimension_numbers = #tpu.dot_dimension_numbers<[1], [0], [0], [1], [0, 0, 1, 1], [], []>} : vector<8x32xf32>, vector<32x128xf32>, vector<8x128xf32> -> vector<8x128xf32>
    %249 = arith.addf %247, %248 : vector<8x128xf32>
    %250 = arith.negf %249 : vector<8x128xf32>
    %251 = math.exp %250 : vector<8x128xf32>
    %cst_87 = arith.constant 1.000000e+00 : f32
    %252 = vector.broadcast %cst_87 : f32 to vector<8x128xf32>
    %253 = arith.addf %252, %251 : vector<8x128xf32>
    %254 = arith.divf %252, %253 : vector<8x128xf32>
    %255 = math.tanh %249 : vector<8x128xf32>
    %256 = vector.extract_strided_slice %254 {offsets = [0, 0], sizes = [8, 32], strides = [1, 1]} : vector<8x128xf32> to vector<8x32xf32>
    %257 = vector.extract_strided_slice %254 {offsets = [0, 32], sizes = [8, 32], strides = [1, 1]} : vector<8x128xf32> to vector<8x32xf32>
    %258 = vector.extract_strided_slice %255 {offsets = [0, 64], sizes = [8, 32], strides = [1, 1]} : vector<8x128xf32> to vector<8x32xf32>
    %259 = vector.extract_strided_slice %254 {offsets = [0, 96], sizes = [8, 32], strides = [1, 1]} : vector<8x128xf32> to vector<8x32xf32>
    %260 = arith.mulf %257, %234 : vector<8x32xf32>
    %261 = arith.mulf %256, %258 : vector<8x32xf32>
    %262 = arith.addf %260, %261 : vector<8x32xf32>
    %263 = math.tanh %262 : vector<8x32xf32>
    %264 = arith.mulf %259, %263 : vector<8x32xf32>
    %265 = arith.index_cast %c1_i32_83 : i32 to index
    %c0_88 = arith.constant 0 : index
    %c0_89 = arith.constant 0 : index
    %266 = vector.load %arg2[%265, %c0_88, %c0_89] : memref<8x8x1xf32, #tpu.memory_space<vmem>>, vector<1x8x1xf32>
    %267 = vector.shape_cast %266 : vector<1x8x1xf32> to vector<8x1xf32>
    %cst_90 = arith.constant 0.000000e+00 : f32
    %268 = vector.broadcast %cst_90 : f32 to vector<8x1xf32>
    %269 = arith.cmpf one, %267, %268 : vector<8x1xf32>
    %270 = vector.shape_cast %269 : vector<8x1xi1> to vector<8x1xi1>
    %271 = vector.broadcast %270 : vector<8x1xi1> to vector<8x32xi1>
    %272 = arith.select %271, %264, %244 : vector<8x32xi1>, vector<8x32xf32>
    %c2_i32_91 = arith.constant 2 : i32
    %273 = arith.index_cast %c2_i32_91 : i32 to index
    %c0_92 = arith.constant 0 : index
    %c0_93 = arith.constant 0 : index
    %274 = vector.load %arg13[%273, %c0_92, %c0_93] : memref<8x8x128xf32, #tpu.memory_space<vmem>>, vector<1x8x128xf32>
    %275 = vector.shape_cast %274 : vector<1x8x128xf32> to vector<8x128xf32>
    %cst_94 = arith.constant dense<0.000000e+00> : vector<8x128xf32>
    %276 = tpu.matmul %264, %215, %cst_94 {dimension_numbers = #tpu.dot_dimension_numbers<[1], [0], [0], [1], [0, 0, 1, 1], [], []>} : vector<8x32xf32>, vector<32x128xf32>, vector<8x128xf32> -> vector<8x128xf32>
    %277 = arith.addf %275, %276 : vector<8x128xf32>
    %278 = arith.negf %277 : vector<8x128xf32>
    %279 = math.exp %278 : vector<8x128xf32>
    %cst_95 = arith.constant 1.000000e+00 : f32
    %280 = vector.broadcast %cst_95 : f32 to vector<8x128xf32>
    %281 = arith.addf %280, %279 : vector<8x128xf32>
    %282 = arith.divf %280, %281 : vector<8x128xf32>
    %283 = math.tanh %277 : vector<8x128xf32>
    %284 = vector.extract_strided_slice %282 {offsets = [0, 0], sizes = [8, 32], strides = [1, 1]} : vector<8x128xf32> to vector<8x32xf32>
    %285 = vector.extract_strided_slice %282 {offsets = [0, 32], sizes = [8, 32], strides = [1, 1]} : vector<8x128xf32> to vector<8x32xf32>
    %286 = vector.extract_strided_slice %283 {offsets = [0, 64], sizes = [8, 32], strides = [1, 1]} : vector<8x128xf32> to vector<8x32xf32>
    %287 = vector.extract_strided_slice %282 {offsets = [0, 96], sizes = [8, 32], strides = [1, 1]} : vector<8x128xf32> to vector<8x32xf32>
    %288 = arith.mulf %285, %262 : vector<8x32xf32>
    %289 = arith.mulf %284, %286 : vector<8x32xf32>
    %290 = arith.addf %288, %289 : vector<8x32xf32>
    %291 = math.tanh %290 : vector<8x32xf32>
    %292 = arith.mulf %287, %291 : vector<8x32xf32>
    %293 = arith.index_cast %c2_i32_91 : i32 to index
    %c0_96 = arith.constant 0 : index
    %c0_97 = arith.constant 0 : index
    %294 = vector.load %arg2[%293, %c0_96, %c0_97] : memref<8x8x1xf32, #tpu.memory_space<vmem>>, vector<1x8x1xf32>
    %295 = vector.shape_cast %294 : vector<1x8x1xf32> to vector<8x1xf32>
    %cst_98 = arith.constant 0.000000e+00 : f32
    %296 = vector.broadcast %cst_98 : f32 to vector<8x1xf32>
    %297 = arith.cmpf one, %295, %296 : vector<8x1xf32>
    %298 = vector.shape_cast %297 : vector<8x1xi1> to vector<8x1xi1>
    %299 = vector.broadcast %298 : vector<8x1xi1> to vector<8x32xi1>
    %300 = arith.select %299, %292, %272 : vector<8x32xi1>, vector<8x32xf32>
    %c3_i32_99 = arith.constant 3 : i32
    %301 = arith.index_cast %c3_i32_99 : i32 to index
    %c0_100 = arith.constant 0 : index
    %c0_101 = arith.constant 0 : index
    %302 = vector.load %arg13[%301, %c0_100, %c0_101] : memref<8x8x128xf32, #tpu.memory_space<vmem>>, vector<1x8x128xf32>
    %303 = vector.shape_cast %302 : vector<1x8x128xf32> to vector<8x128xf32>
    %cst_102 = arith.constant dense<0.000000e+00> : vector<8x128xf32>
    %304 = tpu.matmul %292, %215, %cst_102 {dimension_numbers = #tpu.dot_dimension_numbers<[1], [0], [0], [1], [0, 0, 1, 1], [], []>} : vector<8x32xf32>, vector<32x128xf32>, vector<8x128xf32> -> vector<8x128xf32>
    %305 = arith.addf %303, %304 : vector<8x128xf32>
    %306 = arith.negf %305 : vector<8x128xf32>
    %307 = math.exp %306 : vector<8x128xf32>
    %cst_103 = arith.constant 1.000000e+00 : f32
    %308 = vector.broadcast %cst_103 : f32 to vector<8x128xf32>
    %309 = arith.addf %308, %307 : vector<8x128xf32>
    %310 = arith.divf %308, %309 : vector<8x128xf32>
    %311 = math.tanh %305 : vector<8x128xf32>
    %312 = vector.extract_strided_slice %310 {offsets = [0, 0], sizes = [8, 32], strides = [1, 1]} : vector<8x128xf32> to vector<8x32xf32>
    %313 = vector.extract_strided_slice %310 {offsets = [0, 32], sizes = [8, 32], strides = [1, 1]} : vector<8x128xf32> to vector<8x32xf32>
    %314 = vector.extract_strided_slice %311 {offsets = [0, 64], sizes = [8, 32], strides = [1, 1]} : vector<8x128xf32> to vector<8x32xf32>
    %315 = vector.extract_strided_slice %310 {offsets = [0, 96], sizes = [8, 32], strides = [1, 1]} : vector<8x128xf32> to vector<8x32xf32>
    %316 = arith.mulf %313, %290 : vector<8x32xf32>
    %317 = arith.mulf %312, %314 : vector<8x32xf32>
    %318 = arith.addf %316, %317 : vector<8x32xf32>
    %319 = math.tanh %318 : vector<8x32xf32>
    %320 = arith.mulf %315, %319 : vector<8x32xf32>
    %321 = arith.index_cast %c3_i32_99 : i32 to index
    %c0_104 = arith.constant 0 : index
    %c0_105 = arith.constant 0 : index
    %322 = vector.load %arg2[%321, %c0_104, %c0_105] : memref<8x8x1xf32, #tpu.memory_space<vmem>>, vector<1x8x1xf32>
    %323 = vector.shape_cast %322 : vector<1x8x1xf32> to vector<8x1xf32>
    %cst_106 = arith.constant 0.000000e+00 : f32
    %324 = vector.broadcast %cst_106 : f32 to vector<8x1xf32>
    %325 = arith.cmpf one, %323, %324 : vector<8x1xf32>
    %326 = vector.shape_cast %325 : vector<8x1xi1> to vector<8x1xi1>
    %327 = vector.broadcast %326 : vector<8x1xi1> to vector<8x32xi1>
    %328 = arith.select %327, %320, %300 : vector<8x32xi1>, vector<8x32xf32>
    %c4_i32_107 = arith.constant 4 : i32
    %329 = arith.index_cast %c4_i32_107 : i32 to index
    %c0_108 = arith.constant 0 : index
    %c0_109 = arith.constant 0 : index
    %330 = vector.load %arg13[%329, %c0_108, %c0_109] : memref<8x8x128xf32, #tpu.memory_space<vmem>>, vector<1x8x128xf32>
    %331 = vector.shape_cast %330 : vector<1x8x128xf32> to vector<8x128xf32>
    %cst_110 = arith.constant dense<0.000000e+00> : vector<8x128xf32>
    %332 = tpu.matmul %320, %215, %cst_110 {dimension_numbers = #tpu.dot_dimension_numbers<[1], [0], [0], [1], [0, 0, 1, 1], [], []>} : vector<8x32xf32>, vector<32x128xf32>, vector<8x128xf32> -> vector<8x128xf32>
    %333 = arith.addf %331, %332 : vector<8x128xf32>
    %334 = arith.negf %333 : vector<8x128xf32>
    %335 = math.exp %334 : vector<8x128xf32>
    %cst_111 = arith.constant 1.000000e+00 : f32
    %336 = vector.broadcast %cst_111 : f32 to vector<8x128xf32>
    %337 = arith.addf %336, %335 : vector<8x128xf32>
    %338 = arith.divf %336, %337 : vector<8x128xf32>
    %339 = math.tanh %333 : vector<8x128xf32>
    %340 = vector.extract_strided_slice %338 {offsets = [0, 0], sizes = [8, 32], strides = [1, 1]} : vector<8x128xf32> to vector<8x32xf32>
    %341 = vector.extract_strided_slice %338 {offsets = [0, 32], sizes = [8, 32], strides = [1, 1]} : vector<8x128xf32> to vector<8x32xf32>
    %342 = vector.extract_strided_slice %339 {offsets = [0, 64], sizes = [8, 32], strides = [1, 1]} : vector<8x128xf32> to vector<8x32xf32>
    %343 = vector.extract_strided_slice %338 {offsets = [0, 96], sizes = [8, 32], strides = [1, 1]} : vector<8x128xf32> to vector<8x32xf32>
    %344 = arith.mulf %341, %318 : vector<8x32xf32>
    %345 = arith.mulf %340, %342 : vector<8x32xf32>
    %346 = arith.addf %344, %345 : vector<8x32xf32>
    %347 = math.tanh %346 : vector<8x32xf32>
    %348 = arith.mulf %343, %347 : vector<8x32xf32>
    %349 = arith.index_cast %c4_i32_107 : i32 to index
    %c0_112 = arith.constant 0 : index
    %c0_113 = arith.constant 0 : index
    %350 = vector.load %arg2[%349, %c0_112, %c0_113] : memref<8x8x1xf32, #tpu.memory_space<vmem>>, vector<1x8x1xf32>
    %351 = vector.shape_cast %350 : vector<1x8x1xf32> to vector<8x1xf32>
    %cst_114 = arith.constant 0.000000e+00 : f32
    %352 = vector.broadcast %cst_114 : f32 to vector<8x1xf32>
    %353 = arith.cmpf one, %351, %352 : vector<8x1xf32>
    %354 = vector.shape_cast %353 : vector<8x1xi1> to vector<8x1xi1>
    %355 = vector.broadcast %354 : vector<8x1xi1> to vector<8x32xi1>
    %356 = arith.select %355, %348, %328 : vector<8x32xi1>, vector<8x32xf32>
    %c5_i32_115 = arith.constant 5 : i32
    %357 = arith.index_cast %c5_i32_115 : i32 to index
    %c0_116 = arith.constant 0 : index
    %c0_117 = arith.constant 0 : index
    %358 = vector.load %arg13[%357, %c0_116, %c0_117] : memref<8x8x128xf32, #tpu.memory_space<vmem>>, vector<1x8x128xf32>
    %359 = vector.shape_cast %358 : vector<1x8x128xf32> to vector<8x128xf32>
    %cst_118 = arith.constant dense<0.000000e+00> : vector<8x128xf32>
    %360 = tpu.matmul %348, %215, %cst_118 {dimension_numbers = #tpu.dot_dimension_numbers<[1], [0], [0], [1], [0, 0, 1, 1], [], []>} : vector<8x32xf32>, vector<32x128xf32>, vector<8x128xf32> -> vector<8x128xf32>
    %361 = arith.addf %359, %360 : vector<8x128xf32>
    %362 = arith.negf %361 : vector<8x128xf32>
    %363 = math.exp %362 : vector<8x128xf32>
    %cst_119 = arith.constant 1.000000e+00 : f32
    %364 = vector.broadcast %cst_119 : f32 to vector<8x128xf32>
    %365 = arith.addf %364, %363 : vector<8x128xf32>
    %366 = arith.divf %364, %365 : vector<8x128xf32>
    %367 = math.tanh %361 : vector<8x128xf32>
    %368 = vector.extract_strided_slice %366 {offsets = [0, 0], sizes = [8, 32], strides = [1, 1]} : vector<8x128xf32> to vector<8x32xf32>
    %369 = vector.extract_strided_slice %366 {offsets = [0, 32], sizes = [8, 32], strides = [1, 1]} : vector<8x128xf32> to vector<8x32xf32>
    %370 = vector.extract_strided_slice %367 {offsets = [0, 64], sizes = [8, 32], strides = [1, 1]} : vector<8x128xf32> to vector<8x32xf32>
    %371 = vector.extract_strided_slice %366 {offsets = [0, 96], sizes = [8, 32], strides = [1, 1]} : vector<8x128xf32> to vector<8x32xf32>
    %372 = arith.mulf %369, %346 : vector<8x32xf32>
    %373 = arith.mulf %368, %370 : vector<8x32xf32>
    %374 = arith.addf %372, %373 : vector<8x32xf32>
    %375 = math.tanh %374 : vector<8x32xf32>
    %376 = arith.mulf %371, %375 : vector<8x32xf32>
    %377 = arith.index_cast %c5_i32_115 : i32 to index
    %c0_120 = arith.constant 0 : index
    %c0_121 = arith.constant 0 : index
    %378 = vector.load %arg2[%377, %c0_120, %c0_121] : memref<8x8x1xf32, #tpu.memory_space<vmem>>, vector<1x8x1xf32>
    %379 = vector.shape_cast %378 : vector<1x8x1xf32> to vector<8x1xf32>
    %cst_122 = arith.constant 0.000000e+00 : f32
    %380 = vector.broadcast %cst_122 : f32 to vector<8x1xf32>
    %381 = arith.cmpf one, %379, %380 : vector<8x1xf32>
    %382 = vector.shape_cast %381 : vector<8x1xi1> to vector<8x1xi1>
    %383 = vector.broadcast %382 : vector<8x1xi1> to vector<8x32xi1>
    %384 = arith.select %383, %376, %356 : vector<8x32xi1>, vector<8x32xf32>
    %c6_i32_123 = arith.constant 6 : i32
    %385 = arith.index_cast %c6_i32_123 : i32 to index
    %c0_124 = arith.constant 0 : index
    %c0_125 = arith.constant 0 : index
    %386 = vector.load %arg13[%385, %c0_124, %c0_125] : memref<8x8x128xf32, #tpu.memory_space<vmem>>, vector<1x8x128xf32>
    %387 = vector.shape_cast %386 : vector<1x8x128xf32> to vector<8x128xf32>
    %cst_126 = arith.constant dense<0.000000e+00> : vector<8x128xf32>
    %388 = tpu.matmul %376, %215, %cst_126 {dimension_numbers = #tpu.dot_dimension_numbers<[1], [0], [0], [1], [0, 0, 1, 1], [], []>} : vector<8x32xf32>, vector<32x128xf32>, vector<8x128xf32> -> vector<8x128xf32>
    %389 = arith.addf %387, %388 : vector<8x128xf32>
    %390 = arith.negf %389 : vector<8x128xf32>
    %391 = math.exp %390 : vector<8x128xf32>
    %cst_127 = arith.constant 1.000000e+00 : f32
    %392 = vector.broadcast %cst_127 : f32 to vector<8x128xf32>
    %393 = arith.addf %392, %391 : vector<8x128xf32>
    %394 = arith.divf %392, %393 : vector<8x128xf32>
    %395 = math.tanh %389 : vector<8x128xf32>
    %396 = vector.extract_strided_slice %394 {offsets = [0, 0], sizes = [8, 32], strides = [1, 1]} : vector<8x128xf32> to vector<8x32xf32>
    %397 = vector.extract_strided_slice %394 {offsets = [0, 32], sizes = [8, 32], strides = [1, 1]} : vector<8x128xf32> to vector<8x32xf32>
    %398 = vector.extract_strided_slice %395 {offsets = [0, 64], sizes = [8, 32], strides = [1, 1]} : vector<8x128xf32> to vector<8x32xf32>
    %399 = vector.extract_strided_slice %394 {offsets = [0, 96], sizes = [8, 32], strides = [1, 1]} : vector<8x128xf32> to vector<8x32xf32>
    %400 = arith.mulf %397, %374 : vector<8x32xf32>
    %401 = arith.mulf %396, %398 : vector<8x32xf32>
    %402 = arith.addf %400, %401 : vector<8x32xf32>
    %403 = math.tanh %402 : vector<8x32xf32>
    %404 = arith.mulf %399, %403 : vector<8x32xf32>
    %405 = arith.index_cast %c6_i32_123 : i32 to index
    %c0_128 = arith.constant 0 : index
    %c0_129 = arith.constant 0 : index
    %406 = vector.load %arg2[%405, %c0_128, %c0_129] : memref<8x8x1xf32, #tpu.memory_space<vmem>>, vector<1x8x1xf32>
    %407 = vector.shape_cast %406 : vector<1x8x1xf32> to vector<8x1xf32>
    %cst_130 = arith.constant 0.000000e+00 : f32
    %408 = vector.broadcast %cst_130 : f32 to vector<8x1xf32>
    %409 = arith.cmpf one, %407, %408 : vector<8x1xf32>
    %410 = vector.shape_cast %409 : vector<8x1xi1> to vector<8x1xi1>
    %411 = vector.broadcast %410 : vector<8x1xi1> to vector<8x32xi1>
    %412 = arith.select %411, %404, %384 : vector<8x32xi1>, vector<8x32xf32>
    %c7_i32_131 = arith.constant 7 : i32
    %413 = arith.index_cast %c7_i32_131 : i32 to index
    %c0_132 = arith.constant 0 : index
    %c0_133 = arith.constant 0 : index
    %414 = vector.load %arg13[%413, %c0_132, %c0_133] : memref<8x8x128xf32, #tpu.memory_space<vmem>>, vector<1x8x128xf32>
    %415 = vector.shape_cast %414 : vector<1x8x128xf32> to vector<8x128xf32>
    %cst_134 = arith.constant dense<0.000000e+00> : vector<8x128xf32>
    %416 = tpu.matmul %404, %215, %cst_134 {dimension_numbers = #tpu.dot_dimension_numbers<[1], [0], [0], [1], [0, 0, 1, 1], [], []>} : vector<8x32xf32>, vector<32x128xf32>, vector<8x128xf32> -> vector<8x128xf32>
    %417 = arith.addf %415, %416 : vector<8x128xf32>
    %418 = arith.negf %417 : vector<8x128xf32>
    %419 = math.exp %418 : vector<8x128xf32>
    %cst_135 = arith.constant 1.000000e+00 : f32
    %420 = vector.broadcast %cst_135 : f32 to vector<8x128xf32>
    %421 = arith.addf %420, %419 : vector<8x128xf32>
    %422 = arith.divf %420, %421 : vector<8x128xf32>
    %423 = math.tanh %417 : vector<8x128xf32>
    %424 = vector.extract_strided_slice %422 {offsets = [0, 0], sizes = [8, 32], strides = [1, 1]} : vector<8x128xf32> to vector<8x32xf32>
    %425 = vector.extract_strided_slice %422 {offsets = [0, 32], sizes = [8, 32], strides = [1, 1]} : vector<8x128xf32> to vector<8x32xf32>
    %426 = vector.extract_strided_slice %423 {offsets = [0, 64], sizes = [8, 32], strides = [1, 1]} : vector<8x128xf32> to vector<8x32xf32>
    %427 = vector.extract_strided_slice %422 {offsets = [0, 96], sizes = [8, 32], strides = [1, 1]} : vector<8x128xf32> to vector<8x32xf32>
    %428 = arith.mulf %425, %402 : vector<8x32xf32>
    %429 = arith.mulf %424, %426 : vector<8x32xf32>
    %430 = arith.addf %428, %429 : vector<8x32xf32>
    %431 = math.tanh %430 : vector<8x32xf32>
    %432 = arith.mulf %427, %431 : vector<8x32xf32>
    %433 = arith.index_cast %c7_i32_131 : i32 to index
    %c0_136 = arith.constant 0 : index
    %c0_137 = arith.constant 0 : index
    %434 = vector.load %arg2[%433, %c0_136, %c0_137] : memref<8x8x1xf32, #tpu.memory_space<vmem>>, vector<1x8x1xf32>
    %435 = vector.shape_cast %434 : vector<1x8x1xf32> to vector<8x1xf32>
    %cst_138 = arith.constant 0.000000e+00 : f32
    %436 = vector.broadcast %cst_138 : f32 to vector<8x1xf32>
    %437 = arith.cmpf one, %435, %436 : vector<8x1xf32>
    %438 = vector.shape_cast %437 : vector<8x1xi1> to vector<8x1xi1>
    %439 = vector.broadcast %438 : vector<8x1xi1> to vector<8x32xi1>
    %440 = arith.select %439, %432, %412 : vector<8x32xi1>, vector<8x32xf32>
    %c8_i32_139 = arith.constant 8 : i32
    %c0_140 = arith.constant 0 : index
    %c0_141 = arith.constant 0 : index
    %441 = vector.load %arg11[%c0_140, %c0_141] : memref<8x32xf32, #tpu.memory_space<vmem>>, vector<8x32xf32>
    tpu.vector_store %arg11[%c0_140, %c0_141], %440 {strides = array<i32>} : memref<8x32xf32, #tpu.memory_space<vmem>>, vector<8x32xf32>,
    %c0_142 = arith.constant 0 : index
    %c0_143 = arith.constant 0 : index
    %442 = vector.load %arg9[%c0_142, %c0_143] : memref<32x2xf32, #tpu.memory_space<vmem>>, vector<32x2xf32>
    %cst_144 = arith.constant dense<0.000000e+00> : vector<8x2xf32>
    %443 = tpu.matmul %440, %442, %cst_144 {dimension_numbers = #tpu.dot_dimension_numbers<[1], [0], [0], [1], [0, 0, 1, 1], [], []>} : vector<8x32xf32>, vector<32x2xf32>, vector<8x2xf32> -> vector<8x2xf32>
    %c0_145 = arith.constant 0 : index
    %c0_146 = arith.constant 0 : index
    %444 = vector.load %arg10[%c0_145, %c0_146] : memref<1x2xf32, #tpu.memory_space<vmem>>, vector<1x2xf32>
    %445 = vector.broadcast %444 : vector<1x2xf32> to vector<8x2xf32>
    %446 = arith.addf %443, %445 : vector<8x2xf32>
    %c0_147 = arith.constant 0 : index
    %c0_148 = arith.constant 0 : index
    %447 = vector.load %arg12[%c0_147, %c0_148] : memref<8x2xf32, #tpu.memory_space<vmem>>, vector<8x2xf32>
    tpu.vector_store %arg12[%c0_147, %c0_148], %446 {strides = array<i32>} : memref<8x2xf32, #tpu.memory_space<vmem>>, vector<8x2xf32>,
    return
  }
  func.func @transform_0(%arg0: i32) -> (i32, i32, i32) {
    %c0_i32 = arith.constant 0 : i32
    %c0_i32_0 = arith.constant 0 : i32
    %c0_i32_1 = arith.constant 0 : i32
    return %c0_i32, %arg0, %c0_i32_0 : i32, i32, i32
  }
  func.func @transform_1(%arg0: i32) -> (i32, i32, i32) {
    %c0_i32 = arith.constant 0 : i32
    %c0_i32_0 = arith.constant 0 : i32
    %c0_i32_1 = arith.constant 0 : i32
    return %c0_i32, %arg0, %c0_i32_0 : i32, i32, i32
  }
  func.func @transform_2(%arg0: i32) -> (i32, i32) {
    %c0_i32 = arith.constant 0 : i32
    %c0_i32_0 = arith.constant 0 : i32
    %c0_i32_1 = arith.constant 0 : i32
    return %c0_i32, %c0_i32_0 : i32, i32
  }
  func.func @transform_3(%arg0: i32) -> (i32, i32) {
    %c0_i32 = arith.constant 0 : i32
    %c0_i32_0 = arith.constant 0 : i32
    %c0_i32_1 = arith.constant 0 : i32
    return %c0_i32, %c0_i32_0 : i32, i32
  }
  func.func @transform_4(%arg0: i32) -> (i32, i32) {
    %c0_i32 = arith.constant 0 : i32
    %c0_i32_0 = arith.constant 0 : i32
    %c0_i32_1 = arith.constant 0 : i32
    return %c0_i32, %c0_i32_0 : i32, i32
  }
  func.func @transform_5(%arg0: i32) -> (i32, i32) {
    %c0_i32 = arith.constant 0 : i32
    %c0_i32_0 = arith.constant 0 : i32
    %c0_i32_1 = arith.constant 0 : i32
    return %c0_i32, %c0_i32_0 : i32, i32
  }
  func.func @transform_6(%arg0: i32) -> (i32, i32) {
    %c0_i32 = arith.constant 0 : i32
    %c0_i32_0 = arith.constant 0 : i32
    %c0_i32_1 = arith.constant 0 : i32
    return %c0_i32, %c0_i32_0 : i32, i32
  }
  func.func @transform_7(%arg0: i32) -> (i32, i32) {
    %c0_i32 = arith.constant 0 : i32
    %c0_i32_0 = arith.constant 0 : i32
    %c0_i32_1 = arith.constant 0 : i32
    return %c0_i32, %c0_i32_0 : i32, i32
  }
  func.func @transform_8(%arg0: i32) -> (i32, i32) {
    %c0_i32 = arith.constant 0 : i32
    %c0_i32_0 = arith.constant 0 : i32
    %c0_i32_1 = arith.constant 0 : i32
    return %c0_i32, %c0_i32_0 : i32, i32
  }
  func.func @transform_9(%arg0: i32) -> (i32, i32) {
    %c0_i32 = arith.constant 0 : i32
    %c0_i32_0 = arith.constant 0 : i32
    %c0_i32_1 = arith.constant 0 : i32
    return %c0_i32, %c0_i32_0 : i32, i32
  }
  func.func @transform_10(%arg0: i32) -> (i32, i32) {
    %c0_i32 = arith.constant 0 : i32
    %c0_i32_0 = arith.constant 0 : i32
    return %arg0, %c0_i32 : i32, i32
  }
  func.func @transform_11(%arg0: i32) -> (i32, i32) {
    %c0_i32 = arith.constant 0 : i32
    %c0_i32_0 = arith.constant 0 : i32
    return %arg0, %c0_i32 : i32, i32
  }
}

</mosaic_0001>

<bundles_post_ra>
// kernel: lstm_classifier_forward.1
= control target key start
LH: loop header
LB: loop body
LE: loop exit
PB: predicated region body
PF: predicated region fallthrough
CT: control target
= control target key end

     0   :  { %17 = vsyncpa [#allocation5], 0  ;;  %s2190_s0 = inlined_call_operand.vmem [shape: f32[8,8,16], index: 0, kind: input, shape index: {}]   ;;  %s2191_s1 = inlined_call_operand.vmem [shape: f32[8,8,1], index: 1, kind: input, shape index: {}]   ;;  %s2192_s2 = inlined_call_operand.hbm [shape: f32[16,128], index: 2, kind: input, shape index: {}]   ;;  %s2193_s3 = inlined_call_operand.vmem [shape: f32[32,128], index: 3, kind: input, shape index: {}]   ;;  %s2194_s4 = inlined_call_operand.vmem [shape: f32[1,128], index: 4, kind: input, shape index: {}]   ;;  %s2195_s5 = inlined_call_operand.hbm [shape: f32[32,128], index: 5, kind: input, shape index: {}]   ;;  %s2196_s6 = inlined_call_operand.hbm [shape: f32[32,128], index: 6, kind: input, shape index: {}]   ;;  %s2197_s7 = inlined_call_operand.vmem [shape: f32[1,128], index: 7, kind: input, shape index: {}]   ;;  %s2198_s8 = inlined_call_operand.vmem [shape: f32[32,2], index: 8, kind: input, shape index: {}]   ;;  %s2199_s9 = inlined_call_operand.vmem [shape: f32[1,2], index: 9, kind: input, shape index: {}]   ;;  %s2200_s10 = inlined_call_operand.hbm [shape: f32[8,32], index: 10, kind: output, shape index: {0}]   ;;  %s2201_s11 = inlined_call_operand.vmem [shape: f32[8,2], index: 11, kind: output, shape index: {1}]  }
   0x1   :  { %18 = vsyncpa [#allocation8], 0 }
   0x2   :  { %19 = vsyncpa [#allocation6], 0  ;;  %s45_s19 = sshll.u32 %s2195_s5, 4  ;;  %s1752_s20 = smov [#allocation7]   ;;  %s46_s19 = int_to_ptr.hbm [resolvable:$true] %s45_s19 }
   0x3   :  { %s47_s21 = sshll.u32 %s1752_s20, 4  ;;  %s28_s24 = sshll.u32 %s2192_s2, 4  ;;  %s48_s21 = int_to_ptr.vmem [resolvable:$true] %s47_s21  ;;  %s29_s24 = int_to_ptr.hbm [resolvable:$true] %s28_s24 }
   0x4   :  { %s1753_s25 = smov 128   ;;  %s1754_s26 = smov 8  }
   0x5   :  { %53 = dma.hbm_to_vmem [thread:$0]  %s46_s19, 512, %s48_s21, [#allocation8], %s1753_s25, %s1753_s25, %s1754_s26  }
   0x6   :  { %s1755_s27 = smov [#allocation4]   ;;  %s58_s12 = sshll.u32 %s2196_s6, 4  ;;  %s59_s12 = int_to_ptr.hbm [resolvable:$true] %s58_s12 }
   0x7   :  { %s30_s28 = sshll.u32 %s1755_s27, 4  ;;  %s1756_s5 = smov [#allocation9]   ;;  %s31_s28 = int_to_ptr.vmem [resolvable:$true] %s30_s28 }
   0x8   :  { %36 = dma.hbm_to_vmem [thread:$0]  %s29_s24, 256, %s31_s28, [#allocation5], %s1753_s25, %s1753_s25, %s1754_s26  }
   0x9   :  { %s60_s13 = sshll.u32 %s1756_s5, 4  ;;  %s61_s13 = int_to_ptr.vmem [resolvable:$true] %s60_s13 }
   0xa   :  { %66 = dma.hbm_to_vmem [thread:$0]  %s59_s12, 512, %s61_s13, [#allocation8], %s1753_s25, %s1753_s25, %s1754_s26  }
   0xb   :  { %1746 = dma.done.wait [#allocation5], 256  }
   0xc   :  { %1747 = vsyncadd [#allocation5], 4294967040 }
   0xd   :  { %1748 = dma.done.wait [#allocation8], 1024  }
   0xe   :  { %1749 = vsyncadd [#allocation8], 4294966272  ;;  %v1834_v0 = vld [vmem:[%s2193_s3 + $0x18] sm:$0xff]  ;;  %v94_v1 = vld [vmem:[#allocation4 + $0x8] sm:$0xff]  ;;  %vm99_vm0 = vcmask 130048   ;;  %v1757_v7 = vmov 0.0  }
   0xf   :  { %v1839_v2 = vld [vmem:[%s2193_s3 + $0x10] sm:$0xff]  ;;  %194 = vmatpush.msra.mxu1 %v1834_v0  ;;  %138 = vmatpush.msra.mxu0 %v94_v1  ;;  %v93_v3 = vld [vmem:[#allocation4] sm:$0xff]  ;;  %v1848_v5 = vld [vmem:[%s2193_s3 + $0x8] sm:$0xff]  ;;  %s1758_s23 = smov 64   ;;  %s1759_s24 = smov 32   ;;  %vm178_vm5 = vcmask 261120  }
  0x10   :  { %v85_v4 = vld [vmem:[%s2190_s0] sm:$0xff]  ;;  %261 = vmatpush.msra.mxu2 %v1834_v0  ;;  %v732_v35 = vld [vmem:[#allocation7 + $0x18] sm:$0xff]  ;;  %v730_v38 = vld [vmem:[#allocation7 + $0x8] sm:$0xff]  ;;  %s1436_s19 = sshll.u32 %s2200_s10, 4  ;;  %s1437_s19 = int_to_ptr.hbm [resolvable:$true] %s1436_s19 }
  0x11   :  { %195 = vmatpush.msra.mxu1 %v1839_v2  ;;  %139 = vmatpush.msra.mxu0 %v93_v3  ;;  %v1856_v6 = vld [vmem:[%s2193_s3] sm:$0xff]  ;;  %v86_v37 = vld [vmem:[%s2190_s0 + $0x8] sm:$0xff]  ;;  %v729_v39 = vld [vmem:[#allocation7] sm:$0xff] }
  0x12   :  { %1451 = vmatmul.msk.f32.vlgmr.msra.gmra.mxu0 %vm99_vm0, %v85_v4  ;;  %262 = vmatpush.msra.mxu2 %v1839_v2  ;;  %v1883_v8 = vld [vmem:[%s2194_s4] ss:$0 sm:$0xff] }
  0x13   :  { %196 = vmatpush.msra.mxu1 %v1848_v5  ;;  %533 = vmatpush.msrb.mxu0 %v1834_v0  ;;  %v731_v36 = vld [vmem:[#allocation7 + $0x10] sm:$0xff] }
  0x14   :  { %263 = vmatpush.msra.mxu2 %v1848_v5  ;;  %773 = vmatpush.msra.mxu3 %v732_v35 }
  0x15   :  { %197 = vmatpush.msra.mxu1 %v1856_v6  ;;  %534 = vmatpush.msrb.mxu0 %v1839_v2 }
  0x16   :  { %198 = vmatmul.f32.vlgmr.msra.gmra.mxu1 %v1757_v7  ;;  %264 = vmatpush.msra.mxu2 %v1856_v6 }
  0x17   :  { %397 = vmatpush.msrb.mxu1 %v1834_v0  ;;  %535 = vmatpush.msrb.mxu0 %v1848_v5 }
  0x18   :  { %329 = vmatpush.msrb.mxu2 %v1834_v0  ;;  %774 = vmatpush.msra.mxu3 %v731_v36 }
  0x19   :  { %398 = vmatpush.msrb.mxu1 %v1839_v2  ;;  %536 = vmatpush.msrb.mxu0 %v1856_v6 }
  0x1a   :  { %330 = vmatpush.msrb.mxu2 %v1839_v2  ;;  %1452 = vmatmul.msk.f32.gmra.mxu0 %vm99_vm0, %v86_v37 }
  0x1b   :  { %399 = vmatpush.msrb.mxu1 %v1848_v5  ;;  %775 = vmatpush.msra.mxu3 %v730_v38 }
  0x1c   :  { %331 = vmatpush.msrb.mxu2 %v1848_v5 }
  0x1d   :  { %400 = vmatpush.msrb.mxu1 %v1856_v6  ;;  %776 = vmatpush.msra.mxu3 %v729_v39 }
  0x1e   :  { %332 = vmatpush.msrb.mxu2 %v1856_v6 }
  0x1f   :  { %601 = vmatpush.msra.mxu1 %v1834_v0 }
  0x21   :  { %602 = vmatpush.msra.mxu1 %v1839_v2 }
  0x23   :  { %603 = vmatpush.msra.mxu1 %v1848_v5 }
  0x25   :  { %604 = vmatpush.msra.mxu1 %v1856_v6 }
  0x8f   :  { %v141_v9 = vpop.f32.mrf.mxu0 }
  0x90   :  { %v142_v10 = vadd.f32 %v1883_v8, %v141_v9 }
  0x93   :  { %v199_v11 = vpop.f32.mrf.mxu1 }
  0x94   :  { %v202_v12 = vadd.f32 %v199_v11, %v142_v10  ;;  %v87_v10 = vld [vmem:[%s2190_s0 + $0x10] sm:$0xff] }
  0x95   :  { %1453 = vmatmul.msk.f32.gmra.mxu0 %vm99_vm0, %v87_v10 }
  0x96   :  { %1521 = vtanh.f32 %v202_v12  ;;  %v1459_v14 = vmul.f32 -1.442695, %v202_v12 }
  0x97   :  { %v144_v42 = vpop.f32.mrf.mxu0 }
  0x98   :  { %1523 = vpow2.f32 %v1459_v14  ;;  %v145_v43 = vadd.f32 %v1883_v8, %v144_v42 }
  0x9c   :  { %v1522_v13 = vpop.eup %1521 }
  0x9d   :  { %225 = vrot.lane.b32.xlu0 %v1522_v13, %s1758_s23 }
  0x9e   :  { %v1524_v15 = vpop.eup %1523 }
  0x9f   :  { %v206_v16 = vadd.f32 1.0, %v1524_v15 }
  0xa1   :  { %1525 = vrcp.f32 %v206_v16  ;;  %v218_v22 = vand.u32 2147483648, %v206_v16  ;;  %vm212_vm2 = vweird.f32 %v206_v16  ;;  %v216_v23 = vand.u32 2147483647, %v206_v16 }
  0xa3   :  { %v219_v25 = vor.u32 1.1754944e-38, %v218_v22  ;;  %vm217_vm4 = vcmp.eq.f32.partialorder %v216_v23, 8.507059e+37 }
  0xa7   :  { %v1526_v17 = vpop.eup %1525 }
  0xa8   :  { %v208_v18 = vmul.f32 %v1526_v17, %v206_v16  ;;  %vm213_vm1 = vweird.f32 %v1526_v17 }
  0xa9   :  { %vm214_vm3 = vmor %vm212_vm2, %vm213_vm1 }
  0xaa   :  { %v209_v19 = vsub.f32 1.0, %v208_v18 }
  0xac   :  { %v210_v20 = vmul.f32 %v1526_v17, %v209_v19 }
  0xae   :  { %v211_v21 = vadd.f32 %v1526_v17, %v210_v20 }
  0xb0   :  { %v215_v24 = vsel %vm214_vm3, %v1526_v17, %v211_v21 }
  0xb1   :  { %v220_v27 = vsel %vm217_vm4, %v219_v25, %v215_v24 }
  0xb2   :  { %v223_v29 = vmul.f32 0.0, %v220_v27 }
 0x10f   :  { %v226_v26 = vpop.permute.xlu0 %225 }
 0x110   :  { %v228_v28 = vmul.f32 %v226_v26, %v220_v27 }
 0x112   :  { %230 = vrot.lane.b32.xlu0 %v228_v28, %s1759_s24  ;;  %v147_v13 = vpop.f32.mrf.mxu0 }
 0x113   :  { %v148_v14 = vadd.f32 %v1883_v8, %v147_v13 }
 0x184   :  { %v231_v30 = vpop.permute.xlu0 %230 }
 0x185   :  { %v233_v31 = vadd.f32 %v231_v30, %v223_v29 }
 0x187   :  { %1527 = vtanh.f32 %v233_v31 }
 0x18d   :  { %v1528_v32 = vpop.eup %1527 }
 0x18e   :  { %236 = vrot.lane.b32.xlu1 %v1528_v32, %s1758_s23 }
 0x200   :  { %v237_v33 = vpop.permute.xlu1 %236 }
 0x201   :  { %v239_v34 = vmul.f32 %v237_v33, %v220_v27  ;;  %v88_v33 = vld [vmem:[%s2190_s0 + $0x18] sm:$0xff] }
 0x202   :  { %1454 = vmatmul.msk.f32.gmra.mxu0 %vm99_vm0, %v88_v33 }
 0x203   :  { %241 = vrot.lane.b32.xlu1 %v239_v34, %s1759_s24 }
 0x275   :  { %v242_v40 = vpop.permute.xlu1 %241 }
 0x276   :  { %244 = vst.msk [vmem:[#allocation3] sm:$0xff] %vm178_vm5, %v242_v40  ;;  %1460 = vmatmul.msk.f32.vlgmr.msra.gmra.mxu2 %vm178_vm5, %v242_v40 }
 0x277   :  { %465 = vmatpush.msra.mxu2 %v1834_v0 }
 0x279   :  { %466 = vmatpush.msra.mxu2 %v1839_v2 }
 0x27b   :  { %467 = vmatpush.msra.mxu2 %v1848_v5 }
 0x27d   :  { %v721_v41 = vld [vmem:[#allocation3] sm:$0xff]  ;;  %468 = vmatpush.msra.mxu2 %v1856_v6 }
 0x27e   :  { %1474 = vmatmul.msk.f32.vlgmr.msra.gmra.mxu3 %vm178_vm5, %v721_v41 }
 0x27f   :  { %v150_v38 = vpop.f32.mrf.mxu0 }
 0x280   :  { %v151_v39 = vadd.f32 %v1883_v8, %v150_v38 }
 0x2f9   :  { %v266_v44 = vpop.f32.mrf.mxu2 }
 0x2fa   :  { %v269_v45 = vadd.f32 %v266_v44, %v145_v43 }
 0x2fc   :  { %1529 = vtanh.f32 %v269_v45  ;;  %v1461_v47 = vmul.f32 -1.442695, %v269_v45 }
 0x2fe   :  { %1531 = vpow2.f32 %v1461_v47 }
 0x302   :  { %v1530_v46 = vpop.eup %1529 }
 0x303   :  { %292 = vrot.lane.b32.xlu2 %v1530_v46, %s1758_s23 }
 0x304   :  { %v1532_v48 = vpop.eup %1531 }
 0x305   :  { %v273_v49 = vadd.f32 1.0, %v1532_v48 }
 0x307   :  { %1533 = vrcp.f32 %v273_v49  ;;  %v285_v55 = vand.u32 2147483648, %v273_v49  ;;  %vm279_vm7 = vweird.f32 %v273_v49  ;;  %v283_v56 = vand.u32 2147483647, %v273_v49 }
 0x309   :  { %v286_v58 = vor.u32 1.1754944e-38, %v285_v55  ;;  %vm284_vm9 = vcmp.eq.f32.partialorder %v283_v56, 8.507059e+37 }
 0x30d   :  { %v1534_v50 = vpop.eup %1533 }
 0x30e   :  { %v275_v51 = vmul.f32 %v1534_v50, %v273_v49  ;;  %vm280_vm6 = vweird.f32 %v1534_v50 }
 0x30f   :  { %vm281_vm8 = vmor %vm279_vm7, %vm280_vm6 }
 0x310   :  { %v276_v52 = vsub.f32 1.0, %v275_v51 }
 0x312   :  { %v277_v53 = vmul.f32 %v1534_v50, %v276_v52 }
 0x314   :  { %v278_v54 = vadd.f32 %v1534_v50, %v277_v53 }
 0x316   :  { %v282_v57 = vsel %vm281_vm8, %v1534_v50, %v278_v54 }
 0x317   :  { %v287_v60 = vsel %vm284_vm9, %v286_v58, %v282_v57 }
 0x318   :  { %v290_v62 = vmul.f32 %v287_v60, %v233_v31 }
 0x35d   :  { %v293_v59 = vpop.permute.xlu2 %292 }
 0x35e   :  { %v295_v61 = vmul.f32 %v293_v59, %v287_v60 }
 0x360   :  { %297 = vrot.lane.b32.xlu2 %v295_v61, %s1759_s24 }
 0x3ba   :  { %v298_v63 = vpop.permute.xlu2 %297 }
 0x3bb   :  { %v300_v1 = vadd.f32 %v298_v63, %v290_v62 }
 0x3bd   :  { %1535 = vtanh.f32 %v300_v1 }
 0x3c3   :  { %v1536_v3 = vpop.eup %1535 }
 0x3c4   :  { %303 = vrot.lane.b32.xlu0 %v1536_v3, %s1758_s23 }
 0x436   :  { %v304_v4 = vpop.permute.xlu0 %303 }
 0x437   :  { %v306_v9 = vmul.f32 %v304_v4, %v287_v60 }
 0x439   :  { %308 = vrot.lane.b32.xlu1 %v306_v9, %s1759_s24 }
 0x4ab   :  { %v309_v11 = vpop.permute.xlu1 %308 }
 0x4ac   :  { %312 = vst.msk [vmem:[#allocation3 + $0x8] sm:$0xff] %vm178_vm5, %v309_v11  ;;  %1462 = vmatmul.msk.f32.vlgmr.msrb.gmra.mxu2 %vm178_vm5, %v309_v11 }
 0x4ad   :  { %669 = vmatpush.msrb.mxu2 %v1834_v0 }
 0x4af   :  { %670 = vmatpush.msrb.mxu2 %v1839_v2 }
 0x4b1   :  { %671 = vmatpush.msrb.mxu2 %v1848_v5 }
 0x4b3   :  { %v722_v12 = vld [vmem:[#allocation3 + $0x8] sm:$0xff]  ;;  %672 = vmatpush.msrb.mxu2 %v1856_v6 }
 0x4b4   :  { %1475 = vmatmul.msk.f32.gmra.mxu3 %vm178_vm5, %v722_v12 }
 0x52f   :  { %v334_v15 = vpop.f32.mrf.mxu2 }
 0x530   :  { %v337_v16 = vadd.f32 %v334_v15, %v148_v14 }
 0x532   :  { %1537 = vtanh.f32 %v337_v16  ;;  %v1463_v18 = vmul.f32 -1.442695, %v337_v16 }
 0x534   :  { %1539 = vpow2.f32 %v1463_v18 }
 0x538   :  { %v1538_v17 = vpop.eup %1537 }
 0x539   :  { %360 = vrot.lane.b32.xlu2 %v1538_v17, %s1758_s23 }
 0x53a   :  { %v1540_v0 = vpop.eup %1539 }
 0x53b   :  { %v341_v2 = vadd.f32 1.0, %v1540_v0 }
 0x53d   :  { %1541 = vrcp.f32 %v341_v2  ;;  %v353_v22 = vand.u32 2147483648, %v341_v2  ;;  %vm347_vm11 = vweird.f32 %v341_v2  ;;  %v351_v23 = vand.u32 2147483647, %v341_v2 }
 0x53f   :  { %v354_v25 = vor.u32 1.1754944e-38, %v353_v22  ;;  %vm352_vm13 = vcmp.eq.f32.partialorder %v351_v23, 8.507059e+37 }
 0x543   :  { %v1542_v5 = vpop.eup %1541 }
 0x544   :  { %v343_v19 = vmul.f32 %v1542_v5, %v341_v2  ;;  %vm348_vm10 = vweird.f32 %v1542_v5 }
 0x545   :  { %vm349_vm12 = vmor %vm347_vm11, %vm348_vm10 }
 0x546   :  { %v344_v20 = vsub.f32 1.0, %v343_v19 }
 0x548   :  { %v345_v6 = vmul.f32 %v1542_v5, %v344_v20 }
 0x54a   :  { %v346_v21 = vadd.f32 %v1542_v5, %v345_v6 }
 0x54c   :  { %v350_v24 = vsel %vm349_vm12, %v1542_v5, %v346_v21 }
 0x54d   :  { %v355_v27 = vsel %vm352_vm13, %v354_v25, %v350_v24 }
 0x54e   :  { %v358_v29 = vmul.f32 %v355_v27, %v300_v1  ;;  %v89_v1 = vld [vmem:[%s2190_s0 + $0x20] sm:$0xff] }
 0x54f   :  { %1455 = vmatmul.msk.f32.gmra.mxu0 %vm99_vm0, %v89_v1  ;;  %v1973_v1 = vld [vmem:[#allocation9 + $0x18] sm:$0xff] }
 0x593   :  { %v361_v26 = vpop.permute.xlu2 %360 }
 0x594   :  { %v363_v28 = vmul.f32 %v361_v26, %v355_v27 }
 0x596   :  { %365 = vrot.lane.b32.xlu0 %v363_v28, %s1759_s24 }
 0x5cc   :  { %v153_v9 = vpop.f32.mrf.mxu0 }
 0x5cd   :  { %v154_v10 = vadd.f32 %v1883_v8, %v153_v9  ;;  %v1983_v9 = vld [vmem:[#allocation9] sm:$0xff] }
 0x608   :  { %v366_v30 = vpop.permute.xlu0 %365 }
 0x609   :  { %v368_v31 = vadd.f32 %v366_v30, %v358_v29  ;;  %v90_v29 = vld [vmem:[%s2190_s0 + $0x28] sm:$0xff]  ;;  %v91_v30 = vld [vmem:[%s2190_s0 + $0x30] sm:$0xff] }
 0x60a   :  { %1456 = vmatmul.msk.f32.gmra.mxu0 %vm99_vm0, %v90_v29 }
 0x60b   :  { %1543 = vtanh.f32 %v368_v31 }
 0x611   :  { %v1544_v32 = vpop.eup %1543 }
 0x612   :  { %371 = vrot.lane.b32.xlu1 %v1544_v32, %s1758_s23  ;;  %1457 = vmatmul.msk.f32.gmra.mxu0 %vm99_vm0, %v91_v30 }
 0x684   :  { %v372_v34 = vpop.permute.xlu1 %371 }
 0x685   :  { %v374_v35 = vmul.f32 %v372_v34, %v355_v27 }
 0x687   :  { %376 = vrot.lane.b32.xlu2 %v374_v35, %s1759_s24 }
 0x6e1   :  { %v377_v36 = vpop.permute.xlu2 %376 }
 0x6e2   :  { %380 = vst.msk [vmem:[#allocation3 + $0x10] sm:$0xff] %vm178_vm5, %v377_v36  ;;  %1464 = vmatmul.msk.f32.vlgmr.msrb.gmra.mxu1 %vm178_vm5, %v377_v36  ;;  %v156_v36 = vpop.f32.mrf.mxu0 }
 0x6e3   :  { %827 = vmatpush.msrb.mxu1 %v1973_v1 }
 0x6e9   :  { %v723_v37 = vld [vmem:[#allocation3 + $0x10] sm:$0xff] }
 0x6ea   :  { %1476 = vmatmul.msk.f32.gmra.mxu3 %vm178_vm5, %v723_v37  ;;  %v1961_v37 = vpop.f32.mrf.mxu0 }
 0x75f   :  { %v402_v40 = vpop.f32.mrf.mxu1 }
 0x760   :  { %v405_v41 = vadd.f32 %v402_v40, %v151_v39  ;;  %v157_v39 = vadd.f32 %v1883_v8, %v156_v36 }
 0x762   :  { %1545 = vtanh.f32 %v405_v41  ;;  %v1465_v43 = vmul.f32 -1.442695, %v405_v41 }
 0x764   :  { %1547 = vpow2.f32 %v1465_v43 }
 0x768   :  { %v1546_v42 = vpop.eup %1545 }
 0x769   :  { %428 = vrot.lane.b32.xlu0 %v1546_v42, %s1758_s23 }
 0x76a   :  { %v1548_v44 = vpop.eup %1547 }
 0x76b   :  { %v409_v45 = vadd.f32 1.0, %v1548_v44 }
 0x76d   :  { %1549 = vrcp.f32 %v409_v45  ;;  %v421_v51 = vand.u32 2147483648, %v409_v45  ;;  %vm415_vm15 = vweird.f32 %v409_v45  ;;  %v419_v52 = vand.u32 2147483647, %v409_v45 }
 0x76f   :  { %v422_v54 = vor.u32 1.1754944e-38, %v421_v51  ;;  %vm420_vm2 = vcmp.eq.f32.partialorder %v419_v52, 8.507059e+37 }
 0x773   :  { %v1550_v46 = vpop.eup %1549 }
 0x774   :  { %v411_v47 = vmul.f32 %v1550_v46, %v409_v45  ;;  %vm416_vm14 = vweird.f32 %v1550_v46 }
 0x775   :  { %vm417_vm1 = vmor %vm415_vm15, %vm416_vm14 }
 0x776   :  { %v412_v48 = vsub.f32 1.0, %v411_v47 }
 0x778   :  { %v413_v49 = vmul.f32 %v1550_v46, %v412_v48 }
 0x77a   :  { %v414_v50 = vadd.f32 %v1550_v46, %v413_v49 }
 0x77c   :  { %v418_v53 = vsel %vm417_vm1, %v1550_v46, %v414_v50 }
 0x77d   :  { %v423_v56 = vsel %vm420_vm2, %v422_v54, %v418_v53 }
 0x77e   :  { %v426_v58 = vmul.f32 %v423_v56, %v368_v31  ;;  %v92_v31 = vld [vmem:[%s2190_s0 + $0x38] sm:$0xff] }
 0x77f   :  { %1458 = vmatmul.msk.f32.gmra.mxu0 %vm99_vm0, %v92_v31 }
 0x7db   :  { %v429_v55 = vpop.permute.xlu0 %428 }
 0x7dc   :  { %v431_v57 = vmul.f32 %v429_v55, %v423_v56 }
 0x7de   :  { %433 = vrot.lane.b32.xlu1 %v431_v57, %s1759_s24 }
 0x7fc   :  { %v1963_v38 = vpop.f32.mrf.mxu0 }
 0x850   :  { %v434_v59 = vpop.permute.xlu1 %433 }
 0x851   :  { %v436_v60 = vadd.f32 %v434_v59, %v426_v58 }
 0x853   :  { %1551 = vtanh.f32 %v436_v60 }
 0x859   :  { %v1552_v61 = vpop.eup %1551 }
 0x85a   :  { %439 = vrot.lane.b32.xlu2 %v1552_v61, %s1758_s23 }
 0x8b4   :  { %v440_v62 = vpop.permute.xlu2 %439 }
 0x8b5   :  { %v442_v63 = vmul.f32 %v440_v62, %v423_v56 }
 0x8b7   :  { %444 = vrot.lane.b32.xlu0 %v442_v63, %s1759_s24 }
 0x929   :  { %v445_v3 = vpop.permute.xlu0 %444 }
 0x92a   :  { %448 = vst.msk [vmem:[#allocation3 + $0x18] sm:$0xff] %vm178_vm5, %v445_v3  ;;  %1466 = vmatmul.msk.f32.vlgmr.msra.gmra.mxu2 %vm178_vm5, %v445_v3  ;;  %v1975_v3 = vld [vmem:[#allocation9 + $0x10] sm:$0xff] }
 0x92b   :  { %899 = vmatpush.msra.mxu2 %v1973_v1  ;;  %828 = vmatpush.msrb.mxu1 %v1975_v3 }
 0x92d   :  { %900 = vmatpush.msra.mxu2 %v1975_v3 }
 0x931   :  { %v724_v4 = vld [vmem:[#allocation3 + $0x18] sm:$0xff] }
 0x932   :  { %1477 = vmatmul.msk.f32.gmra.mxu3 %vm178_vm5, %v724_v4  ;;  %v1979_v4 = vld [vmem:[#allocation9 + $0x8] sm:$0xff] }
 0x933   :  { %829 = vmatpush.msrb.mxu1 %v1979_v4  ;;  %901 = vmatpush.msra.mxu2 %v1979_v4 }
 0x935   :  { %830 = vmatpush.msrb.mxu1 %v1983_v9  ;;  %902 = vmatpush.msra.mxu2 %v1983_v9 }
 0x9ad   :  { %v470_v11 = vpop.f32.mrf.mxu2 }
 0x9ae   :  { %v473_v12 = vadd.f32 %v470_v11, %v154_v10 }
 0x9b0   :  { %1553 = vtanh.f32 %v473_v12  ;;  %v1467_v14 = vmul.f32 -1.442695, %v473_v12  ;;  %v160_v12 = vadd.f32 %v1883_v8, %v1961_v37 }
 0x9b2   :  { %1555 = vpow2.f32 %v1467_v14 }
 0x9b6   :  { %v1554_v13 = vpop.eup %1553 }
 0x9b7   :  { %496 = vrot.lane.b32.xlu1 %v1554_v13, %s1758_s23 }
 0x9b8   :  { %v1556_v15 = vpop.eup %1555 }
 0x9b9   :  { %v477_v16 = vadd.f32 1.0, %v1556_v15  ;;  %v2006_v15 = vld [vmem:[%s2197_s7] ss:$0 sm:$0xff] }
 0x9bb   :  { %1557 = vrcp.f32 %v477_v16  ;;  %v489_v19 = vand.u32 2147483648, %v477_v16  ;;  %vm483_vm4 = vweird.f32 %v477_v16  ;;  %v487_v20 = vand.u32 2147483647, %v477_v16 }
 0x9bd   :  { %v490_v21 = vor.u32 1.1754944e-38, %v489_v19  ;;  %vm488_vm7 = vcmp.eq.f32.partialorder %v487_v20, 8.507059e+37 }
 0x9c1   :  { %v1558_v17 = vpop.eup %1557 }
 0x9c2   :  { %v479_v18 = vmul.f32 %v1558_v17, %v477_v16  ;;  %vm484_vm3 = vweird.f32 %v1558_v17 }
 0x9c3   :  { %vm485_vm6 = vmor %vm483_vm4, %vm484_vm3 }
 0x9c4   :  { %v480_v0 = vsub.f32 1.0, %v479_v18 }
 0x9c6   :  { %v481_v2 = vmul.f32 %v1558_v17, %v480_v0 }
 0x9c8   :  { %v482_v5 = vadd.f32 %v1558_v17, %v481_v2 }
 0x9ca   :  { %v486_v6 = vsel %vm485_vm6, %v1558_v17, %v482_v5 }
 0x9cb   :  { %v491_v23 = vsel %vm488_vm7, %v490_v21, %v486_v6 }
 0x9cc   :  { %v494_v25 = vmul.f32 %v491_v23, %v436_v60 }
 0xa29   :  { %v497_v22 = vpop.permute.xlu1 %496 }
 0xa2a   :  { %v499_v24 = vmul.f32 %v497_v22, %v491_v23 }
 0xa2c   :  { %501 = vrot.lane.b32.xlu2 %v499_v24, %s1759_s24 }
 0xa86   :  { %v502_v26 = vpop.permute.xlu2 %501 }
 0xa87   :  { %v504_v27 = vadd.f32 %v502_v26, %v494_v25 }
 0xa89   :  { %1559 = vtanh.f32 %v504_v27 }
 0xa8f   :  { %v1560_v28 = vpop.eup %1559 }
 0xa90   :  { %507 = vrot.lane.b32.xlu0 %v1560_v28, %s1758_s23 }
 0xb02   :  { %v508_v32 = vpop.permute.xlu0 %507 }
 0xb03   :  { %v510_v33 = vmul.f32 %v508_v32, %v491_v23 }
 0xb05   :  { %512 = vrot.lane.b32.xlu1 %v510_v33, %s1759_s24 }
 0xb77   :  { %v513_v34 = vpop.permute.xlu1 %512 }
 0xb78   :  { %516 = vst.msk [vmem:[#allocation3 + $0x20] sm:$0xff] %vm178_vm5, %v513_v34  ;;  %1468 = vmatmul.msk.f32.vlgmr.msrb.gmra.mxu0 %vm178_vm5, %v513_v34 }
 0xb7f   :  { %v725_v35 = vld [vmem:[#allocation3 + $0x20] sm:$0xff] }
 0xb80   :  { %1478 = vmatmul.msk.f32.gmra.mxu3 %vm178_vm5, %v725_v35 }
 0xbf5   :  { %v538_v40 = vpop.f32.mrf.mxu0 }
 0xbf6   :  { %v541_v41 = vadd.f32 %v538_v40, %v157_v39 }
 0xbf8   :  { %1561 = vtanh.f32 %v541_v41  ;;  %v1469_v43 = vmul.f32 -1.442695, %v541_v41 }
 0xbfa   :  { %1563 = vpow2.f32 %v1469_v43 }
 0xbfe   :  { %v1562_v42 = vpop.eup %1561 }
 0xbff   :  { %564 = vrot.lane.b32.xlu2 %v1562_v42, %s1758_s23 }
 0xc00   :  { %v1564_v44 = vpop.eup %1563 }
 0xc01   :  { %v545_v45 = vadd.f32 1.0, %v1564_v44 }
 0xc03   :  { %1565 = vrcp.f32 %v545_v45  ;;  %v557_v51 = vand.u32 2147483648, %v545_v45  ;;  %vm551_vm8 = vweird.f32 %v545_v45  ;;  %v555_v52 = vand.u32 2147483647, %v545_v45 }
 0xc05   :  { %v558_v54 = vor.u32 1.1754944e-38, %v557_v51  ;;  %vm556_vm10 = vcmp.eq.f32.partialorder %v555_v52, 8.507059e+37 }
 0xc09   :  { %v1566_v46 = vpop.eup %1565 }
 0xc0a   :  { %v547_v47 = vmul.f32 %v1566_v46, %v545_v45  ;;  %vm552_vm0 = vweird.f32 %v1566_v46 }
 0xc0b   :  { %vm553_vm9 = vmor %vm551_vm8, %vm552_vm0 }
 0xc0c   :  { %v548_v48 = vsub.f32 1.0, %v547_v47 }
 0xc0e   :  { %v549_v49 = vmul.f32 %v1566_v46, %v548_v48 }
 0xc10   :  { %v550_v50 = vadd.f32 %v1566_v46, %v549_v49 }
 0xc12   :  { %v554_v53 = vsel %vm553_vm9, %v1566_v46, %v550_v50 }
 0xc13   :  { %v559_v56 = vsel %vm556_vm10, %v558_v54, %v554_v53 }
 0xc14   :  { %v562_v58 = vmul.f32 %v559_v56, %v504_v27 }
 0xc59   :  { %v565_v55 = vpop.permute.xlu2 %564 }
 0xc5a   :  { %v567_v57 = vmul.f32 %v565_v55, %v559_v56 }
 0xc5c   :  { %569 = vrot.lane.b32.xlu0 %v567_v57, %s1759_s24 }
 0xcce   :  { %v570_v59 = vpop.permute.xlu0 %569 }
 0xccf   :  { %v1968_v60 = vadd.f32 %v570_v59, %v562_v58 }
 0xcd1   :  { %1567 = vtanh.f32 %v1968_v60 }
 0xcd7   :  { %v1568_v61 = vpop.eup %1567 }
 0xcd8   :  { %575 = vrot.lane.b32.xlu1 %v1568_v61, %s1758_s23 }
 0xd4a   :  { %v576_v62 = vpop.permute.xlu1 %575 }
 0xd4b   :  { %v578_v63 = vmul.f32 %v576_v62, %v559_v56 }
 0xd4d   :  { %580 = vrot.lane.b32.xlu2 %v578_v63, %s1759_s24 }
 0xda7   :  { %v581_v10 = vpop.permute.xlu2 %580 }
 0xda8   :  { %584 = vst.msk [vmem:[#allocation3 + $0x28] sm:$0xff] %vm178_vm5, %v581_v10  ;;  %1470 = vmatmul.msk.f32.vlgmr.msra.gmra.mxu1 %vm178_vm5, %v581_v10 }
 0xda9   :  { %972 = vmatpush.msra.mxu1 %v1973_v1 }
 0xdab   :  { %973 = vmatpush.msra.mxu1 %v1975_v3 }
 0xdad   :  { %974 = vmatpush.msra.mxu1 %v1979_v4 }
 0xdaf   :  { %v726_v11 = vld [vmem:[#allocation3 + $0x28] sm:$0xff]  ;;  %975 = vmatpush.msra.mxu1 %v1983_v9 }
 0xdb0   :  { %1479 = vmatmul.msk.f32.gmra.mxu3 %vm178_vm5, %v726_v11  ;;  %831 = vmatmul.f32.vlgmr.msrb.gmra.mxu1 %v1757_v7  ;;  %v778_v7 = vpop.f32.mrf.mxu3 }
 0xdb1   :  { %1118 = vmatpush.msrb.mxu1 %v1973_v1  ;;  %v779_v16 = vadd.f32 %v2006_v15, %v778_v7 }
 0xdb3   :  { %1119 = vmatpush.msrb.mxu1 %v1975_v3 }
 0xdb5   :  { %1120 = vmatpush.msrb.mxu1 %v1979_v4 }
 0xdb7   :  { %1121 = vmatpush.msrb.mxu1 %v1983_v9 }
 0xdb8   :  { %v781_v63 = vpop.f32.mrf.mxu3 }
 0xdb9   :  { %v782_v10 = vadd.f32 %v2006_v15, %v781_v63 }
 0xe25   :  { %v606_v13 = vpop.f32.mrf.mxu1 }
 0xe26   :  { %v609_v14 = vadd.f32 %v606_v13, %v160_v12 }
 0xe28   :  { %1569 = vtanh.f32 %v609_v14  ;;  %v1471_v8 = vmul.f32 -1.442695, %v609_v14 }
 0xe2d   :  { %v832_v17 = vpop.f32.mrf.mxu1 }
 0xe2e   :  { %v1570_v18 = vpop.eup %1569  ;;  %v835_v0 = vadd.f32 %v832_v17, %v779_v16 }
 0xe2f   :  { %632 = vrot.lane.b32.xlu0 %v1570_v18, %s1758_s23 }
 0xe30   :  { %1571 = vtanh.f32 %v835_v0  ;;  %v1482_v5 = vmul.f32 -1.442695, %v835_v0 }
 0xe31   :  { %1573 = vpow2.f32 %v1471_v8 }
 0xe32   :  { %1575 = vpow2.f32 %v1482_v5 }
 0xe36   :  { %v1572_v2 = vpop.eup %1571 }
 0xe37   :  { %858 = vrot.lane.b32.xlu1 %v1572_v2, %s1758_s23  ;;  %v1574_v19 = vpop.eup %1573 }
 0xe38   :  { %v613_v20 = vadd.f32 1.0, %v1574_v19  ;;  %v1576_v6 = vpop.eup %1575 }
 0xe39   :  { %v839_v21 = vadd.f32 1.0, %v1576_v6 }
 0xe3a   :  { %1577 = vrcp.f32 %v613_v20  ;;  %v625_v30 = vand.u32 2147483648, %v613_v20  ;;  %vm619_vm12 = vweird.f32 %v613_v20  ;;  %v623_v31 = vand.u32 2147483647, %v613_v20 }
 0xe3b   :  { %1579 = vrcp.f32 %v839_v21  ;;  %v851_v40 = vand.u32 2147483648, %v839_v21  ;;  %vm845_vm1 = vweird.f32 %v839_v21  ;;  %v849_v41 = vand.u32 2147483647, %v839_v21 }
 0xe3c   :  { %v626_v34 = vor.u32 1.1754944e-38, %v625_v30  ;;  %vm624_vm14 = vcmp.eq.f32.partialorder %v623_v31, 8.507059e+37  ;;  %v784_v31 = vpop.f32.mrf.mxu3 }
 0xe3d   :  { %v852_v43 = vor.u32 1.1754944e-38, %v851_v40  ;;  %vm850_vm3 = vcmp.eq.f32.partialorder %v849_v41, 8.507059e+37 }
 0xe40   :  { %v1578_v22 = vpop.eup %1577 }
 0xe41   :  { %v615_v23 = vmul.f32 %v1578_v22, %v613_v20  ;;  %v1580_v25 = vpop.eup %1579  ;;  %vm620_vm11 = vweird.f32 %v1578_v22 }
 0xe42   :  { %v841_v27 = vmul.f32 %v1580_v25, %v839_v21  ;;  %vm621_vm13 = vmor %vm619_vm12, %vm620_vm11  ;;  %vm846_vm15 = vweird.f32 %v1580_v25 }
 0xe43   :  { %v616_v24 = vsub.f32 1.0, %v615_v23  ;;  %vm847_vm2 = vmor %vm845_vm1, %vm846_vm15 }
 0xe44   :  { %v842_v29 = vsub.f32 1.0, %v841_v27 }
 0xe45   :  { %v617_v26 = vmul.f32 %v1578_v22, %v616_v24 }
 0xe46   :  { %v843_v33 = vmul.f32 %v1580_v25, %v842_v29 }
 0xe47   :  { %v618_v28 = vadd.f32 %v1578_v22, %v617_v26 }
 0xe48   :  { %v844_v39 = vadd.f32 %v1580_v25, %v843_v33 }
 0xe49   :  { %v622_v32 = vsel %vm621_vm13, %v1578_v22, %v618_v28 }
 0xe4a   :  { %v627_v36 = vsel %vm624_vm14, %v626_v34, %v622_v32  ;;  %v848_v42 = vsel %vm847_vm2, %v1580_v25, %v844_v39  ;;  %v785_v32 = vadd.f32 %v2006_v15, %v784_v31 }
 0xe4b   :  { %v853_v45 = vsel %vm850_vm3, %v852_v43, %v848_v42  ;;  %v630_v47 = vmul.f32 %v627_v36, %v1968_v60 }
 0xe4c   :  { %v856_v51 = vmul.f32 0.0, %v853_v45 }
 0xea1   :  { %v633_v35 = vpop.permute.xlu0 %632 }
 0xea2   :  { %v635_v37 = vmul.f32 %v633_v35, %v627_v36 }
 0xea4   :  { %637 = vrot.lane.b32.xlu2 %v635_v37, %s1759_s24 }
 0xea9   :  { %v859_v44 = vpop.permute.xlu1 %858 }
 0xeaa   :  { %v861_v46 = vmul.f32 %v859_v44, %v853_v45 }
 0xeac   :  { %863 = vrot.lane.b32.xlu0 %v861_v46, %s1759_s24 }
 0xefe   :  { %v638_v48 = vpop.permute.xlu2 %637 }
 0xeff   :  { %v2014_v49 = vadd.f32 %v638_v48, %v630_v47 }
 0xf01   :  { %1581 = vtanh.f32 %v2014_v49 }
 0xf07   :  { %v1582_v50 = vpop.eup %1581 }
 0xf08   :  { %643 = vrot.lane.b32.xlu1 %v1582_v50, %s1758_s23 }
 0xf1e   :  { %v864_v52 = vpop.permute.xlu0 %863 }
 0xf1f   :  { %v866_v53 = vadd.f32 %v864_v52, %v856_v51 }
 0xf21   :  { %1583 = vtanh.f32 %v866_v53 }
 0xf27   :  { %v1584_v54 = vpop.eup %1583 }
 0xf28   :  { %869 = vrot.lane.b32.xlu2 %v1584_v54, %s1758_s23 }
 0xf7a   :  { %v644_v55 = vpop.permute.xlu1 %643 }
 0xf7b   :  { %v646_v56 = vmul.f32 %v644_v55, %v627_v36 }
 0xf7d   :  { %648 = vrot.lane.b32.xlu0 %v646_v56, %s1759_s24 }
 0xf82   :  { %v870_v57 = vpop.permute.xlu2 %869 }
 0xf83   :  { %v2020_v58 = vmul.f32 %v870_v57, %v853_v45 }
 0xf85   :  { %883 = vrot.lane.b32.xlu1 %v2020_v58, %s1759_s24 }
 0xfef   :  { %v649_v59 = vpop.permute.xlu0 %648 }
 0xff0   :  { %652 = vst.msk [vmem:[#allocation3 + $0x30] sm:$0xff] %vm178_vm5, %v649_v59  ;;  %1472 = vmatmul.msk.f32.vlgmr.msrb.gmra.mxu2 %vm178_vm5, %v649_v59 }
 0xff1   :  { %1045 = vmatpush.msrb.mxu2 %v1973_v1 }
 0xff3   :  { %1046 = vmatpush.msrb.mxu2 %v1975_v3 }
 0xff5   :  { %1047 = vmatpush.msrb.mxu2 %v1979_v4 }
 0xff7   :  { %v884_v60 = vpop.permute.xlu1 %883  ;;  %v727_v61 = vld [vmem:[#allocation3 + $0x30] sm:$0xff]  ;;  %1048 = vmatpush.msrb.mxu2 %v1983_v9 }
 0xff8   :  { %1480 = vmatmul.msk.f32.gmra.mxu3 %vm178_vm5, %v727_v61  ;;  %1483 = vmatmul.msk.f32.vlgmr.msra.gmra.mxu2 %vm178_vm5, %v884_v60  ;;  %v787_v61 = vpop.f32.mrf.mxu3 }
 0xff9   :  { %1191 = vmatpush.msra.mxu2 %v1973_v1  ;;  %v788_v63 = vadd.f32 %v2006_v15, %v787_v61 }
 0xffb   :  { %1192 = vmatpush.msra.mxu2 %v1975_v3 }
 0xffd   :  { %1193 = vmatpush.msra.mxu2 %v1979_v4 }
 0xfff   :  { %1194 = vmatpush.msra.mxu2 %v1983_v9 }
0x1073   :  { %v2036_v62 = vpop.f32.mrf.mxu2 }
0x107b   :  { %v904_v11 = vpop.f32.mrf.mxu2 }
0x107c   :  { %v907_v12 = vadd.f32 %v904_v11, %v782_v10 }
0x107e   :  { %1585 = vtanh.f32 %v907_v12  ;;  %v1484_v14 = vmul.f32 -1.442695, %v907_v12 }
0x1080   :  { %1587 = vpow2.f32 %v1484_v14 }
0x1084   :  { %v1586_v13 = vpop.eup %1585 }
0x1085   :  { %930 = vrot.lane.b32.xlu2 %v1586_v13, %s1758_s23 }
0x1086   :  { %v1588_v7 = vpop.eup %1587 }
0x1087   :  { %v911_v16 = vadd.f32 1.0, %v1588_v7 }
0x1089   :  { %1589 = vrcp.f32 %v911_v16  ;;  %v923_v5 = vand.u32 2147483648, %v911_v16  ;;  %vm917_vm6 = vweird.f32 %v911_v16  ;;  %v921_v19 = vand.u32 2147483647, %v911_v16 }
0x108b   :  { %v924_v6 = vor.u32 1.1754944e-38, %v923_v5  ;;  %vm922_vm0 = vcmp.eq.f32.partialorder %v921_v19, 8.507059e+37 }
0x108f   :  { %v1590_v17 = vpop.eup %1589 }
0x1090   :  { %v913_v18 = vmul.f32 %v1590_v17, %v911_v16  ;;  %vm918_vm4 = vweird.f32 %v1590_v17 }
0x1091   :  { %vm919_vm7 = vmor %vm917_vm6, %vm918_vm4 }
0x1092   :  { %v914_v0 = vsub.f32 1.0, %v913_v18 }
0x1094   :  { %v915_v2 = vmul.f32 %v1590_v17, %v914_v0 }
0x1096   :  { %v916_v8 = vadd.f32 %v1590_v17, %v915_v2 }
0x1098   :  { %v920_v20 = vsel %vm919_vm7, %v1590_v17, %v916_v8 }
0x1099   :  { %v925_v22 = vsel %vm922_vm0, %v924_v6, %v920_v20 }
0x109a   :  { %v928_v24 = vmul.f32 %v925_v22, %v866_v53 }
0x10df   :  { %v931_v21 = vpop.permute.xlu2 %930 }
0x10e0   :  { %v933_v23 = vmul.f32 %v931_v21, %v925_v22 }
0x10e2   :  { %935 = vrot.lane.b32.xlu0 %v933_v23, %s1759_s24 }
0x1154   :  { %v936_v25 = vpop.permute.xlu0 %935 }
0x1155   :  { %v938_v26 = vadd.f32 %v936_v25, %v928_v24 }
0x1157   :  { %1591 = vtanh.f32 %v938_v26 }
0x115d   :  { %v1592_v27 = vpop.eup %1591 }
0x115e   :  { %941 = vrot.lane.b32.xlu1 %v1592_v27, %s1758_s23 }
0x11d0   :  { %v942_v28 = vpop.permute.xlu1 %941 }
0x11d1   :  { %v2042_v29 = vmul.f32 %v942_v28, %v925_v22 }
0x11d3   :  { %956 = vrot.lane.b32.xlu2 %v2042_v29, %s1759_s24 }
0x122d   :  { %v957_v30 = vpop.permute.xlu2 %956 }
0x122e   :  { %1486 = vmatmul.msk.f32.vlgmr.msra.gmra.mxu1 %vm178_vm5, %v957_v30 }
0x122f   :  { %1264 = vmatpush.msra.mxu1 %v1973_v1 }
0x1231   :  { %1265 = vmatpush.msra.mxu1 %v1975_v3 }
0x1233   :  { %1266 = vmatpush.msra.mxu1 %v1979_v4 }
0x1235   :  { %1267 = vmatpush.msra.mxu1 %v1983_v9 }
0x12ab   :  { %v977_v33 = vpop.f32.mrf.mxu1 }
0x12ac   :  { %v980_v34 = vadd.f32 %v977_v33, %v785_v32 }
0x12ae   :  { %1593 = vtanh.f32 %v980_v34  ;;  %v1487_v36 = vmul.f32 -1.442695, %v980_v34 }
0x12b0   :  { %1595 = vpow2.f32 %v1487_v36 }
0x12b4   :  { %v1594_v35 = vpop.eup %1593 }
0x12b5   :  { %1003 = vrot.lane.b32.xlu0 %v1594_v35, %s1758_s23 }
0x12b6   :  { %v1596_v37 = vpop.eup %1595 }
0x12b7   :  { %v984_v39 = vadd.f32 1.0, %v1596_v37 }
0x12b9   :  { %1597 = vrcp.f32 %v984_v39  ;;  %v996_v45 = vand.u32 2147483648, %v984_v39  ;;  %vm990_vm9 = vweird.f32 %v984_v39  ;;  %v994_v46 = vand.u32 2147483647, %v984_v39 }
0x12bb   :  { %v997_v48 = vor.u32 1.1754944e-38, %v996_v45  ;;  %vm995_vm11 = vcmp.eq.f32.partialorder %v994_v46, 8.507059e+37 }
0x12bf   :  { %v1598_v40 = vpop.eup %1597 }
0x12c0   :  { %v986_v41 = vmul.f32 %v1598_v40, %v984_v39  ;;  %vm991_vm8 = vweird.f32 %v1598_v40 }
0x12c1   :  { %vm992_vm10 = vmor %vm990_vm9, %vm991_vm8 }
0x12c2   :  { %v987_v42 = vsub.f32 1.0, %v986_v41 }
0x12c4   :  { %v988_v43 = vmul.f32 %v1598_v40, %v987_v42 }
0x12c6   :  { %v989_v44 = vadd.f32 %v1598_v40, %v988_v43 }
0x12c8   :  { %v993_v47 = vsel %vm992_vm10, %v1598_v40, %v989_v44 }
0x12c9   :  { %v998_v51 = vsel %vm995_vm11, %v997_v48, %v993_v47 }
0x12ca   :  { %v1001_v53 = vmul.f32 %v998_v51, %v938_v26  ;;  %v790_v26 = vpop.f32.mrf.mxu3 }
0x12cb   :  { %v791_v27 = vadd.f32 %v2006_v15, %v790_v26 }
0x1327   :  { %v1004_v50 = vpop.permute.xlu0 %1003 }
0x1328   :  { %v1006_v52 = vmul.f32 %v1004_v50, %v998_v51 }
0x132a   :  { %1008 = vrot.lane.b32.xlu1 %v1006_v52, %s1759_s24 }
0x139c   :  { %v1009_v54 = vpop.permute.xlu1 %1008 }
0x139d   :  { %v1011_v55 = vadd.f32 %v1009_v54, %v1001_v53 }
0x139f   :  { %1599 = vtanh.f32 %v1011_v55 }
0x13a5   :  { %v1600_v56 = vpop.eup %1599 }
0x13a6   :  { %1014 = vrot.lane.b32.xlu2 %v1600_v56, %s1758_s23  ;;  %v793_v56 = vpop.f32.mrf.mxu3 }
0x1400   :  { %v1015_v57 = vpop.permute.xlu2 %1014 }
0x1401   :  { %v2055_v59 = vmul.f32 %v1015_v57, %v998_v51  ;;  %v794_v57 = vadd.f32 %v2006_v15, %v793_v56 }
0x1403   :  { %1029 = vrot.lane.b32.xlu0 %v2055_v59, %s1759_s24 }
0x1475   :  { %v1030_v60 = vpop.permute.xlu0 %1029 }
0x1476   :  { %1489 = vmatmul.msk.f32.vlgmr.msrb.gmra.mxu2 %vm178_vm5, %v1030_v60 }
0x1477   :  { %1337 = vmatpush.msrb.mxu2 %v1973_v1 }
0x1479   :  { %1338 = vmatpush.msrb.mxu2 %v1975_v3 }
0x147b   :  { %1339 = vmatpush.msrb.mxu2 %v1979_v4 }
0x147d   :  { %1340 = vmatpush.msrb.mxu2 %v1983_v9 }
0x14f9   :  { %v1050_v10 = vpop.f32.mrf.mxu2 }
0x14fa   :  { %v1053_v11 = vadd.f32 %v1050_v10, %v788_v63 }
0x14fc   :  { %1601 = vtanh.f32 %v1053_v11  ;;  %v1490_v13 = vmul.f32 -1.442695, %v1053_v11 }
0x14fe   :  { %1603 = vpow2.f32 %v1490_v13 }
0x1502   :  { %v1602_v12 = vpop.eup %1601 }
0x1503   :  { %1076 = vrot.lane.b32.xlu1 %v1602_v12, %s1758_s23 }
0x1504   :  { %v1604_v14 = vpop.eup %1603 }
0x1505   :  { %v1057_v7 = vadd.f32 1.0, %v1604_v14 }
0x1507   :  { %1605 = vrcp.f32 %v1057_v7  ;;  %v1069_v9 = vand.u32 2147483648, %v1057_v7  ;;  %vm1063_vm13 = vweird.f32 %v1057_v7  ;;  %v1067_v18 = vand.u32 2147483647, %v1057_v7 }
0x1509   :  { %v1070_v2 = vor.u32 1.1754944e-38, %v1069_v9  ;;  %vm1068_vm15 = vcmp.eq.f32.partialorder %v1067_v18, 8.507059e+37  ;;  %v1649_v9 = vld [vmem:[%s2194_s4] ss:$0 sm:$0xff] }
0x150a   :  { %v163_v18 = vadd.f32 %v1649_v9, %v1963_v38 }
0x150d   :  { %v1606_v1 = vpop.eup %1605 }
0x150e   :  { %v1059_v3 = vmul.f32 %v1606_v1, %v1057_v7  ;;  %vm1064_vm12 = vweird.f32 %v1606_v1 }
0x150f   :  { %vm1065_vm14 = vmor %vm1063_vm13, %vm1064_vm12 }
0x1510   :  { %v1060_v16 = vsub.f32 1.0, %v1059_v3 }
0x1512   :  { %v1061_v4 = vmul.f32 %v1606_v1, %v1060_v16 }
0x1514   :  { %v1062_v17 = vadd.f32 %v1606_v1, %v1061_v4 }
0x1516   :  { %v1066_v0 = vsel %vm1065_vm14, %v1606_v1, %v1062_v17 }
0x1517   :  { %v1071_v5 = vsel %vm1068_vm15, %v1070_v2, %v1066_v0  ;;  %v677_v2 = vadd.f32 %v2036_v62, %v163_v18 }
0x1518   :  { %v1074_v20 = vmul.f32 %v1071_v5, %v1011_v55 }
0x1575   :  { %v1077_v8 = vpop.permute.xlu1 %1076 }
0x1576   :  { %v1079_v19 = vmul.f32 %v1077_v8, %v1071_v5 }
0x1578   :  { %1081 = vrot.lane.b32.xlu2 %v1079_v19, %s1759_s24 }
0x15d2   :  { %v1082_v6 = vpop.permute.xlu2 %1081 }
0x15d3   :  { %v1084_v21 = vadd.f32 %v1082_v6, %v1074_v20 }
0x15d5   :  { %1607 = vtanh.f32 %v1084_v21 }
0x15db   :  { %v1608_v22 = vpop.eup %1607 }
0x15dc   :  { %1087 = vrot.lane.b32.xlu0 %v1608_v22, %s1758_s23 }
0x164e   :  { %v1088_v23 = vpop.permute.xlu0 %1087 }
0x164f   :  { %v2068_v24 = vmul.f32 %v1088_v23, %v1071_v5  ;;  %v1473_v23 = vmul.f32 -1.442695, %v677_v2 }
0x1651   :  { %1102 = vrot.lane.b32.xlu1 %v2068_v24, %s1759_s24 }
0x16c3   :  { %v1103_v25 = vpop.permute.xlu1 %1102 }
0x16c4   :  { %1492 = vmatmul.msk.f32.vlgmr.msrb.gmra.mxu1 %vm178_vm5, %v1103_v25 }
0x1741   :  { %v1123_v28 = vpop.f32.mrf.mxu1 }
0x1742   :  { %v1126_v30 = vadd.f32 %v1123_v28, %v791_v27 }
0x1744   :  { %1609 = vtanh.f32 %v1126_v30  ;;  %v1493_v32 = vmul.f32 -1.442695, %v1126_v30 }
0x1746   :  { %1611 = vpow2.f32 %v1493_v32 }
0x174a   :  { %v1610_v31 = vpop.eup %1609 }
0x174b   :  { %1149 = vrot.lane.b32.xlu2 %v1610_v31, %s1758_s23 }
0x174c   :  { %v1612_v33 = vpop.eup %1611 }
0x174d   :  { %v1130_v34 = vadd.f32 1.0, %v1612_v33 }
0x174f   :  { %1613 = vrcp.f32 %v1130_v34  ;;  %v1142_v41 = vand.u32 2147483648, %v1130_v34  ;;  %vm1136_vm2 = vweird.f32 %v1130_v34  ;;  %v1140_v42 = vand.u32 2147483647, %v1130_v34 }
0x1751   :  { %v1143_v44 = vor.u32 1.1754944e-38, %v1142_v41  ;;  %vm1141_vm4 = vcmp.eq.f32.partialorder %v1140_v42, 8.507059e+37 }
0x1755   :  { %v1614_v35 = vpop.eup %1613 }
0x1756   :  { %v1132_v36 = vmul.f32 %v1614_v35, %v1130_v34  ;;  %vm1137_vm1 = vweird.f32 %v1614_v35 }
0x1757   :  { %vm1138_vm3 = vmor %vm1136_vm2, %vm1137_vm1 }
0x1758   :  { %v1133_v37 = vsub.f32 1.0, %v1132_v36 }
0x175a   :  { %v1134_v39 = vmul.f32 %v1614_v35, %v1133_v37 }
0x175c   :  { %v1135_v40 = vadd.f32 %v1614_v35, %v1134_v39 }
0x175e   :  { %v1139_v43 = vsel %vm1138_vm3, %v1614_v35, %v1135_v40 }
0x175f   :  { %v1144_v46 = vsel %vm1141_vm4, %v1143_v44, %v1139_v43  ;;  %v796_v43 = vpop.f32.mrf.mxu3 }
0x1760   :  { %v1147_v48 = vmul.f32 %v1144_v46, %v1084_v21  ;;  %v797_v44 = vadd.f32 %v2006_v15, %v796_v43 }
0x17a5   :  { %v1150_v45 = vpop.permute.xlu2 %1149 }
0x17a6   :  { %v1152_v47 = vmul.f32 %v1150_v45, %v1144_v46 }
0x17a8   :  { %1154 = vrot.lane.b32.xlu0 %v1152_v47, %s1759_s24 }
0x181a   :  { %v1155_v50 = vpop.permute.xlu0 %1154 }
0x181b   :  { %v1157_v51 = vadd.f32 %v1155_v50, %v1147_v48 }
0x181d   :  { %1615 = vtanh.f32 %v1157_v51 }
0x1823   :  { %v1616_v52 = vpop.eup %1615 }
0x1824   :  { %1160 = vrot.lane.b32.xlu1 %v1616_v52, %s1758_s23 }
0x1896   :  { %v1161_v53 = vpop.permute.xlu1 %1160 }
0x1897   :  { %v2077_v54 = vmul.f32 %v1161_v53, %v1144_v46 }
0x1899   :  { %1175 = vrot.lane.b32.xlu2 %v2077_v54, %s1759_s24 }
0x18f3   :  { %v1176_v55 = vpop.permute.xlu2 %1175 }
0x18f4   :  { %1495 = vmatmul.msk.f32.vlgmr.msra.gmra.mxu2 %vm178_vm5, %v1176_v55 }
0x1977   :  { %v1196_v60 = vpop.f32.mrf.mxu2 }
0x1978   :  { %v1199_v61 = vadd.f32 %v1196_v60, %v794_v57 }
0x197a   :  { %1617 = vtanh.f32 %v1199_v61  ;;  %v1496_v10 = vmul.f32 -1.442695, %v1199_v61 }
0x197c   :  { %1619 = vpow2.f32 %v1496_v10 }
0x1980   :  { %v1618_v63 = vpop.eup %1617 }
0x1981   :  { %1222 = vrot.lane.b32.xlu0 %v1618_v63, %s1758_s23 }
0x1982   :  { %v1620_v11 = vpop.eup %1619 }
0x1983   :  { %v1203_v12 = vadd.f32 1.0, %v1620_v11 }
0x1985   :  { %1621 = vrcp.f32 %v1203_v12  ;;  %v1215_v16 = vand.u32 2147483648, %v1203_v12  ;;  %vm1209_vm7 = vweird.f32 %v1203_v12  ;;  %v1213_v4 = vand.u32 2147483647, %v1203_v12 }
0x1986   :  { %1623 = vtanh.f32 %v677_v2 }
0x1987   :  { %v1216_v0 = vor.u32 1.1754944e-38, %v1215_v16  ;;  %vm1214_vm8 = vcmp.eq.f32.partialorder %v1213_v4, 8.507059e+37 }
0x198b   :  { %v1622_v13 = vpop.eup %1621 }
0x198c   :  { %v1205_v14 = vmul.f32 %v1622_v13, %v1203_v12  ;;  %vm1210_vm6 = vweird.f32 %v1622_v13  ;;  %v1624_v20 = vpop.eup %1623 }
0x198d   :  { %vm1211_vm0 = vmor %vm1209_vm7, %vm1210_vm6 }
0x198e   :  { %v1206_v7 = vsub.f32 1.0, %v1205_v14 }
0x1990   :  { %v1207_v1 = vmul.f32 %v1622_v13, %v1206_v7 }
0x1992   :  { %v1208_v3 = vadd.f32 %v1622_v13, %v1207_v1 }
0x1994   :  { %v1212_v17 = vsel %vm1211_vm0, %v1622_v13, %v1208_v3 }
0x1995   :  { %v1217_v5 = vsel %vm1214_vm8, %v1216_v0, %v1212_v17 }
0x1996   :  { %v1220_v6 = vmul.f32 %v1217_v5, %v1157_v51 }
0x19f3   :  { %v1223_v8 = vpop.permute.xlu0 %1222 }
0x19f4   :  { %v1225_v19 = vmul.f32 %v1223_v8, %v1217_v5  ;;  %v1760_v8 = vmov 0  }
0x19f5   :  { %1515 = vset.pattern.permute.xlu2 %v1760_v8  ;;  %1516 = vset.pattern.permute.xlu0 %v1760_v8 }
0x19f6   :  { %1227 = vrot.lane.b32.xlu1 %v1225_v19, %s1759_s24 }
0x19f7   :  { %1517 = vset.pattern.permute.xlu1 %v1760_v8 }
0x19fe   :  { %700 = vrot.lane.b32.xlu1 %v1624_v20, %s1758_s23  ;;  %v873_v20 = vld [vmem:[%s2191_s1] sm:$0xff] }
0x19ff   :  { %vm874_vm2 = vcmp.ne.f32.partialorder %v873_v20, 0.0 }
0x1a68   :  { %v1228_v21 = vpop.permute.xlu1 %1227 }
0x1a69   :  { %v2091_v22 = vadd.f32 %v1228_v21, %v1220_v6  ;;  %v875_v6 = vsel %vm874_vm2, 1, %v1760_v8 }
0x1a6b   :  { %1625 = vtanh.f32 %v2091_v22 }
0x1a6c   :  { %1627 = vpow2.f32 %v1473_v23 }
0x1a70   :  { %v701_v39 = vpop.permute.xlu1 %700 }
0x1a71   :  { %v1626_v38 = vpop.eup %1625 }
0x1a72   :  { %1233 = vrot.lane.b32.xlu2 %v1626_v38, %s1758_s23  ;;  %v1628_v62 = vpop.eup %1627 }
0x1a73   :  { %v681_v25 = vadd.f32 1.0, %v1628_v62 }
0x1a75   :  { %1629 = vrcp.f32 %v681_v25  ;;  %v693_v34 = vand.u32 2147483648, %v681_v25  ;;  %vm687_vm10 = vweird.f32 %v681_v25  ;;  %v691_v35 = vand.u32 2147483647, %v681_v25 }
0x1a77   :  { %v694_v37 = vor.u32 1.1754944e-38, %v693_v34  ;;  %vm692_vm12 = vcmp.eq.f32.partialorder %v691_v35, 8.507059e+37  ;;  %v1500_v35 = vld [vmem:[%s2191_s1 + $0x30] sm:$0xff] }
0x1a78   :  { %vm1312_vm4 = vcmp.ne.f32.partialorder %v1500_v35, 0.0 }
0x1a7b   :  { %v1630_v26 = vpop.eup %1629 }
0x1a7c   :  { %v683_v27 = vmul.f32 %v1630_v26, %v681_v25  ;;  %vm688_vm9 = vweird.f32 %v1630_v26 }
0x1a7d   :  { %vm689_vm11 = vmor %vm687_vm10, %vm688_vm9 }
0x1a7e   :  { %v684_v28 = vsub.f32 1.0, %v683_v27 }
0x1a80   :  { %v685_v30 = vmul.f32 %v1630_v26, %v684_v28 }
0x1a82   :  { %v686_v32 = vadd.f32 %v1630_v26, %v685_v30 }
0x1a84   :  { %v690_v36 = vsel %vm689_vm11, %v1630_v26, %v686_v32  ;;  %v1485_v26 = vld [vmem:[%s2191_s1 + $0x8] sm:$0xff] }
0x1a85   :  { %v695_v40 = vsel %vm692_vm12, %v694_v37, %v690_v36  ;;  %vm947_vm3 = vcmp.ne.f32.partialorder %v1485_v26, 0.0  ;;  %v1491_v36 = vld [vmem:[%s2191_s1 + $0x18] sm:$0xff]  ;;  %v1313_v37 = vsel %vm1312_vm4, 1, %v1760_v8 }
0x1a86   :  { %v703_v41 = vmul.f32 %v701_v39, %v695_v40  ;;  %v698_v48 = vmul.f32 %v695_v40, %v2014_v49  ;;  %v948_v27 = vsel %vm947_vm3, 1, %v1760_v8  ;;  %vm1093_vm6 = vcmp.ne.f32.partialorder %v1491_v36, 0.0 }
0x1acc   :  { %v1234_v31 = vpop.permute.xlu2 %1233 }
0x1acd   :  { %v2095_v33 = vmul.f32 %v1234_v31, %v1217_v5 }
0x1acf   :  { %1248 = vrot.lane.b32.xlu0 %v2095_v33, %s1759_s24 }
0x1ad7   :  { %705 = vrot.lane.b32.xlu0 %v703_v41, %s1759_s24  ;;  %v1497_v41 = vld [vmem:[%s2191_s1 + $0x28] sm:$0xff] }
0x1ad8   :  { %vm1239_vm7 = vcmp.ne.f32.partialorder %v1497_v41, 0.0 }
0x1b41   :  { %v1249_v42 = vpop.permute.xlu0 %1248 }
0x1b42   :  { %1498 = vmatmul.msk.f32.vlgmr.msra.gmra.mxu1 %vm178_vm5, %v1249_v42 }
0x1b49   :  { %v706_v47 = vpop.permute.xlu0 %705 }
0x1b4a   :  { %v708_v50 = vadd.f32 %v706_v47, %v698_v48 }
0x1bbf   :  { %v1269_v45 = vpop.f32.mrf.mxu1 }
0x1bc0   :  { %v1272_v46 = vadd.f32 %v1269_v45, %v797_v44  ;;  %v1240_v45 = vsel %vm1239_vm7, 1, %v1760_v8 }
0x1bc2   :  { %1631 = vtanh.f32 %v1272_v46  ;;  %v1499_v53 = vmul.f32 -1.442695, %v1272_v46 }
0x1bc3   :  { %1633 = vtanh.f32 %v708_v50 }
0x1bc4   :  { %1635 = vpow2.f32 %v1499_v53 }
0x1bc8   :  { %v1632_v51 = vpop.eup %1631 }
0x1bc9   :  { %1295 = vrot.lane.b32.xlu2 %v1632_v51, %s1758_s23  ;;  %v1634_v52 = vpop.eup %1633 }
0x1bca   :  { %v1636_v55 = vpop.eup %1635 }
0x1bcb   :  { %v1276_v56 = vadd.f32 1.0, %v1636_v55  ;;  %v1494_v55 = vld [vmem:[%s2191_s1 + $0x20] sm:$0xff] }
0x1bcc   :  { %vm1166_vm12 = vcmp.ne.f32.partialorder %v1494_v55, 0.0 }
0x1bcd   :  { %1637 = vrcp.f32 %v1276_v56  ;;  %v1288_v49 = vand.u32 2147483648, %v1276_v56  ;;  %vm1282_vm14 = vweird.f32 %v1276_v56  ;;  %v1286_v11 = vand.u32 2147483647, %v1276_v56 }
0x1bcf   :  { %v1289_v13 = vor.u32 1.1754944e-38, %v1288_v49  ;;  %vm1287_vm1 = vcmp.eq.f32.partialorder %v1286_v11, 8.507059e+37  ;;  %v1400_v11 = vld [vmem:[%s2198_s8 + $0x18] sm:$0xff] }
0x1bd0   :  { %1419 = vmatpush.msrb.mxu1 %v1400_v11 }
0x1bd1   :  { %711 = vrot.lane.b32.xlu2 %v1634_v52, %s1758_s23  ;;  %v1488_v52 = vld [vmem:[%s2191_s1 + $0x10] sm:$0xff] }
0x1bd2   :  { %vm1020_vm11 = vcmp.ne.f32.partialorder %v1488_v52, 0.0 }
0x1bd3   :  { %v1638_v57 = vpop.eup %1637  ;;  %v1021_v53 = vsel %vm1020_vm11, 1, %v1760_v8 }
0x1bd4   :  { %v1278_v60 = vmul.f32 %v1638_v57, %v1276_v56  ;;  %vm1283_vm13 = vweird.f32 %v1638_v57  ;;  %v1167_v56 = vsel %vm1166_vm12, 1, %v1760_v8 }
0x1bd5   :  { %vm1284_vm15 = vmor %vm1282_vm14, %vm1283_vm13 }
0x1bd6   :  { %v1279_v61 = vsub.f32 1.0, %v1278_v60 }
0x1bd8   :  { %v1280_v63 = vmul.f32 %v1638_v57, %v1279_v61 }
0x1bda   :  { %v1281_v10 = vadd.f32 %v1638_v57, %v1280_v63 }
0x1bdc   :  { %v1285_v12 = vsel %vm1284_vm15, %v1638_v57, %v1281_v10  ;;  %v1503_v57 = vld [vmem:[%s2191_s1 + $0x38] sm:$0xff] }
0x1bdd   :  { %v1290_v7 = vsel %vm1287_vm1, %v1289_v13, %v1285_v12  ;;  %vm1385_vm13 = vcmp.ne.f32.partialorder %v1503_v57, 0.0  ;;  %v1399_v12 = vld [vmem:[%s2198_s8 + $0x10] sm:$0xff] }
0x1bde   :  { %v1293_v4 = vmul.f32 %v1290_v7, %v2091_v22  ;;  %v1386_v60 = vsel %vm1385_vm13, 1, %v1760_v8  ;;  %1420 = vmatpush.msrb.mxu1 %v1399_v12 }
0x1c23   :  { %v1296_v14 = vpop.permute.xlu2 %1295 }
0x1c24   :  { %v1298_v1 = vmul.f32 %v1296_v14, %v1290_v7  ;;  %v1398_v14 = vld [vmem:[%s2198_s8 + $0x8] sm:$0xff] }
0x1c25   :  { %1421 = vmatpush.msrb.mxu1 %v1398_v14 }
0x1c26   :  { %1300 = vrot.lane.b32.xlu1 %v1298_v1, %s1759_s24 }
0x1c2b   :  { %v712_v3 = vpop.permute.xlu2 %711 }
0x1c2c   :  { %v714_v16 = vmul.f32 %v712_v3, %v695_v40  ;;  %v1094_v40 = vsel %vm1093_vm6, 1, %v1760_v8 }
0x1c2e   :  { %716 = vrot.lane.b32.xlu1 %v714_v16, %s1759_s24 }
0x1c98   :  { %v1301_v17 = vpop.permute.xlu1 %1300 }
0x1c99   :  { %v2108_v9 = vadd.f32 %v1301_v17, %v1293_v4 }
0x1c9b   :  { %1639 = vtanh.f32 %v2108_v9 }
0x1ca0   :  { %v717_v18 = vpop.permute.xlu1 %716 }
0x1ca1   :  { %v1640_v0 = vpop.eup %1639  ;;  %720 = vst.msk [vmem:[#allocation3 + $0x38] sm:$0xff] %vm178_vm5, %v717_v18 }
0x1ca2   :  { %1306 = vrot.lane.b32.xlu0 %v1640_v0, %s1758_s23 }
0x1ca8   :  { %v728_v2 = vld [vmem:[#allocation3 + $0x38] sm:$0xff] }
0x1ca9   :  { %1481 = vmatmul.msk.f32.gmra.mxu3 %vm178_vm5, %v728_v2 }
0x1d14   :  { %v1307_v5 = vpop.permute.xlu0 %1306 }
0x1d15   :  { %v2117_v19 = vmul.f32 %v1307_v5, %v1290_v7  ;;  %v1397_v7 = vld [vmem:[%s2198_s8] sm:$0xff]  ;;  %s1761_s8 = smov [#allocation10]  }
0x1d16   :  { %1422 = vmatpush.msrb.mxu1 %v1397_v7 }
0x1d17   :  { %1321 = vrot.lane.b32.xlu2 %v2117_v19, %s1759_s24 }
0x1d1f   :  { %877 = vperm.xlu2 %1515, %v875_v6  }
0x1d27   :  { %1096 = vperm.xlu2 %1515, %v1094_v40  }
0x1d2c   :  { %v799_v22 = vpop.f32.mrf.mxu3 }
0x1d2d   :  { %v800_v38 = vadd.f32 %v2006_v15, %v799_v22 }
0x1d2f   :  { %1242 = vperm.xlu2 %1515, %v1240_v45  }
0x1d37   :  { %1388 = vperm.xlu2 %1515, %v1386_v60  }
0x1d71   :  { %v1322_v21 = vpop.permute.xlu2 %1321 }
0x1d72   :  { %1501 = vmatmul.msk.f32.vlgmr.msrb.gmra.mxu2 %vm178_vm5, %v1322_v21 }
0x1d79   :  { %v878_v13 = vpop.permute.xlu2 %877 }
0x1d7a   :  { %vm879_vm14 = vcmp.eq.s32.totalorder %v878_v13, 1 }
0x1d7b   :  { %v880_v4 = vsel %vm879_vm14, %v2020_v58, 0.0 }
0x1d81   :  { %v1097_v3 = vpop.permute.xlu2 %1096 }
0x1d82   :  { %vm1098_vm2 = vcmp.eq.s32.totalorder %v1097_v3, 1 }
0x1d89   :  { %v1243_v18 = vpop.permute.xlu2 %1242 }
0x1d8a   :  { %vm1244_vm4 = vcmp.eq.s32.totalorder %v1243_v18, 1 }
0x1d91   :  { %v1389_v6 = vpop.permute.xlu2 %1388 }
0x1d92   :  { %vm1390_vm7 = vcmp.eq.s32.totalorder %v1389_v6, 1 }
0x1df5   :  { %v1342_v23 = vpop.f32.mrf.mxu2 }
0x1df6   :  { %v1345_v62 = vadd.f32 %v1342_v23, %v800_v38 }
0x1df8   :  { %1641 = vtanh.f32 %v1345_v62  ;;  %v1502_v28 = vmul.f32 -1.442695, %v1345_v62 }
0x1dfa   :  { %1643 = vpow2.f32 %v1502_v28 }
0x1dfe   :  { %v1642_v25 = vpop.eup %1641 }
0x1dff   :  { %1368 = vrot.lane.b32.xlu0 %v1642_v25, %s1758_s23 }
0x1e00   :  { %v1644_v30 = vpop.eup %1643 }
0x1e01   :  { %v1349_v31 = vadd.f32 1.0, %v1644_v30 }
0x1e03   :  { %1645 = vrcp.f32 %v1349_v31  ;;  %v1361_v43 = vand.u32 2147483648, %v1349_v31  ;;  %vm1355_vm8 = vweird.f32 %v1349_v31  ;;  %v1359_v44 = vand.u32 2147483647, %v1349_v31 }
0x1e05   :  { %v1362_v47 = vor.u32 1.1754944e-38, %v1361_v43  ;;  %vm1360_vm10 = vcmp.eq.f32.partialorder %v1359_v44, 8.507059e+37 }
0x1e07   :  { %950 = vperm.xlu0 %1516, %v948_v27  }
0x1e09   :  { %v1646_v15 = vpop.eup %1645 }
0x1e0a   :  { %v1351_v32 = vmul.f32 %v1646_v15, %v1349_v31  ;;  %vm1356_vm0 = vweird.f32 %v1646_v15 }
0x1e0b   :  { %vm1357_vm9 = vmor %vm1355_vm8, %vm1356_vm0  ;;  %vm1427_vm0 = vcmask 15360  }
0x1e0c   :  { %v1352_v34 = vsub.f32 1.0, %v1351_v32 }
0x1e0e   :  { %v1353_v39 = vmul.f32 %v1646_v15, %v1352_v34 }
0x1e0f   :  { %1315 = vperm.xlu0 %1516, %v1313_v37  }
0x1e10   :  { %v1354_v42 = vadd.f32 %v1646_v15, %v1353_v39 }
0x1e12   :  { %v1358_v46 = vsel %vm1357_vm9, %v1646_v15, %v1354_v42 }
0x1e13   :  { %v1363_v50 = vsel %vm1360_vm10, %v1362_v47, %v1358_v46 }
0x1e14   :  { %v1366_v61 = vmul.f32 %v1363_v50, %v2108_v9 }
0x1e71   :  { %v1369_v48 = vpop.permute.xlu0 %1368 }
0x1e72   :  { %v1371_v51 = vmul.f32 %v1369_v48, %v1363_v50 }
0x1e74   :  { %1373 = vrot.lane.b32.xlu1 %v1371_v51, %s1759_s24 }
0x1e79   :  { %v951_v16 = vpop.permute.xlu0 %950 }
0x1e7a   :  { %vm952_vm15 = vcmp.eq.s32.totalorder %v951_v16, 1 }
0x1e7b   :  { %v953_v9 = vsel %vm952_vm15, %v2042_v29, %v880_v4 }
0x1e7c   :  { %1023 = vperm.xlu1 %1517, %v1021_v53  }
0x1e81   :  { %v1316_v5 = vpop.permute.xlu0 %1315 }
0x1e82   :  { %vm1317_vm6 = vcmp.eq.s32.totalorder %v1316_v5, 1 }
0x1e84   :  { %1169 = vperm.xlu1 %1517, %v1167_v56  }
0x1ee6   :  { %v1374_v63 = vpop.permute.xlu1 %1373 }
0x1ee7   :  { %v1376_v10 = vadd.f32 %v1374_v63, %v1366_v61 }
0x1ee9   :  { %1647 = vtanh.f32 %v1376_v10 }
0x1eee   :  { %v1024_v1 = vpop.permute.xlu1 %1023 }
0x1eef   :  { %v1648_v49 = vpop.eup %1647  ;;  %vm1025_vm1 = vcmp.eq.s32.totalorder %v1024_v1, 1 }
0x1ef0   :  { %1379 = vrot.lane.b32.xlu1 %v1648_v49, %s1758_s23  ;;  %v1026_v0 = vsel %vm1025_vm1, %v2055_v59, %v953_v9  ;;  %s1434_s23 = sshll.u32 %s1761_s8, 4  ;;  %s1435_s23 = int_to_ptr.vmem [resolvable:$true] %s1434_s23 }
0x1ef1   :  { %v1099_v2 = vsel %vm1098_vm2, %v2068_v24, %v1026_v0  ;;  %v1520_v24 = vld [vmem:[%s2199_s9] ss:$0 sm:$0xff] }
0x1ef6   :  { %v1170_v17 = vpop.permute.xlu1 %1169 }
0x1ef7   :  { %vm1171_vm3 = vcmp.eq.s32.totalorder %v1170_v17, 1 }
0x1ef8   :  { %v1172_v8 = vsel %vm1171_vm3, %v2077_v54, %v1099_v2 }
0x1ef9   :  { %v1245_v20 = vsel %vm1244_vm4, %v2095_v33, %v1172_v8 }
0x1efa   :  { %v1318_v22 = vsel %vm1317_vm6, %v2117_v19, %v1245_v20 }
0x1f62   :  { %v1380_v21 = vpop.permute.xlu1 %1379 }
0x1f63   :  { %v1382_v58 = vmul.f32 %v1380_v21, %v1363_v50 }
0x1f65   :  { %v1391_v29 = vsel %vm1390_vm7, %v1382_v58, %v1318_v22 }
0x1f66   :  { %1393 = vrot.lane.b32.xlu0 %v1391_v29, %s1759_s24 }
0x1fd8   :  { %v1394_v59 = vpop.permute.xlu0 %1393 }
0x1fd9   :  { %1396 = vst.msk [vmem:[#allocation10] sm:$0xff] %vm178_vm5, %v1394_v59  ;;  %1504 = vmatmul.msk.f32.vlgmr.msrb.gmra.mxu1 %vm178_vm5, %v1394_v59 }
0x1fda   :  { %1439 = dma.vmem_to_hbm [thread:$0]  %s1435_s23, 128, %s1437_s19, [#allocation6]  }
0x2056   :  { %v1424_v54 = vpop.f32.mrf.mxu1 }
0x2057   :  { %v1425_v33 = vadd.f32 %v1520_v24, %v1424_v54 }
0x2059   :  { %1428 = vst.msk [vmem:[%s2201_s11] sm:$0xff] %vm1427_vm0, %v1425_v33 }
0x205a   :  { %1750 = dma.done.wait [#allocation6], 128  }
0x205b   :  { %1751 = vsyncadd [#allocation6], 4294967168 }
0x205c   :  { %1448 = vsyncpa [#allocation5], 1 }
0x205d   :  { %1449 = vsyncpa [#allocation8], 1 }
0x205e   :  { %1450 = vsyncpa [#allocation6], 1 }

</bundles_post_ra>
